<compile_context>
chip_gen: v5e
topology: v5e:2x2
jax: 0.10.0
libtpu: 0.0.40
codegen_flags: <defaults>
</compile_context>

<pallas_src>
import jax
import jax.numpy as jnp
from jax import lax
from jax.experimental import pallas as pl
from jax.experimental.pallas import tpu as pltpu


def _round_up(v, m):
    return ((v + m - 1) // m) * m


def _cdiv(a, b):
    return (a + b - 1) // b


def _default_b_tile():
    # 256 rows fills the v6e/v7x MXU; v4/v5 have 128-deep MXUs (and v5e a 16 MiB
    # scoped-VMEM default), so use 128 there.
    try:
        kind = jax.devices()[0].device_kind.lower()
    except Exception:
        kind = ""
    return 256 if ("v6" in kind or "v7" in kind) else 128


def _decoder_kernel(x_ref, lexp_ref, lsum_ref,
                    wstack_ref, bstack_ref,
                    wfc_ref, bfc_ref, w1_ref, b1_ref, w2_ref, b2_ref,
                    out_ref, h_ref):
    Tc, Bt, Dp = x_ref.shape            # x chunk: (T_chunk, B_tile, D_pad), time-major
    t_blk = pl.program_id(1)
    n_blk = pl.num_programs(1)

    # Reset the carried hidden state at the start of each batch tile's T sweep.
    @pl.when(t_blk == 0)
    def _():
        h_ref[...] = jnp.zeros_like(h_ref)

    # Hoist weight load / bias broadcast out of the recurrence.
    w_stack = wstack_ref[...]                                     # (2*Dp, 4*Dp) MXU dtype
    b_stack = jnp.broadcast_to(bstack_ref[...], (Bt, 4 * Dp))     # f32

    # ---- GRU recurrence (PyTorch gate order r, z, n) ----
    # One fused MXU matmul per step: [x_t | h] @ [[Wir Wiz Win 0], [Whr Whz 0 Whn]].
    def gru_step(t, hprev):
        xt = x_ref[t]                                             # (Bt, Dp)
        xh = jnp.concatenate([xt, hprev.astype(xt.dtype)], axis=1)  # (Bt, 2*Dp)
        g = jnp.dot(xh, w_stack, preferred_element_type=jnp.float32) + b_stack
        r = jax.nn.sigmoid(g[:, :Dp])
        z = jax.nn.sigmoid(g[:, Dp:2 * Dp])
        n = jnp.tanh(g[:, 2 * Dp:3 * Dp] + r * g[:, 3 * Dp:])
        return (1.0 - z) * n + z * hprev

    h_new = lax.fori_loop(0, Tc, gru_step, h_ref[...],
                          unroll=(Tc if Tc <= 8 else 8))
    h_ref[...] = h_new

    # ---- station combine + MLP, only after the last T chunk ----
    #   sum_s l[b,s] * (h_s @ wfc + bfc) == (h * l_exp) @ wfc_rep + (sum_s l[b,s]) * bfc
    @pl.when(t_blk == n_blk - 1)
    def _():
        mxd = wfc_ref.dtype
        hw = (h_new * lexp_ref[...]).astype(mxd)
        ret = (jnp.dot(hw, wfc_ref[...], preferred_element_type=jnp.float32)
               + lsum_ref[...] * bfc_ref[...])
        y = jnp.maximum(
            jnp.dot(ret.astype(mxd), w1_ref[...], preferred_element_type=jnp.float32)
            + b1_ref[...], 0.0)
        out = (jnp.dot(y.astype(mxd), w2_ref[...], preferred_element_type=jnp.float32)
               + b2_ref[...])
        out_ref[...] = out.astype(out_ref.dtype)


def wocli_decoder_forward(x, h, l, climate, params, *, num_stat, in_ft,
                          b_tile=None, t_chunk_budget_bytes=8 << 20,
                          use_bf16=True):
    """Pallas implementation of WoCli_Decoder.forward (GRU path)."""
    del climate  # unused by the PyTorch forward as well (so is self.embed)
    B, T, S, _ = x.shape
    assert S == num_stat
    D = S * in_ft

    (wir, wiz, win, whr, whz, whn,
     bir, biz, bin_, bhr, bhz, bhn,
     wfc, bfc, w1, b1, w2, b2) = params
    cnn_hid = wfc.shape[1]
    fc_hid = w1.shape[1]
    out_ft = w2.shape[1]

    f32 = jnp.float32
    mx_dtype = jnp.bfloat16 if use_bf16 else jnp.float32
    itm = 2 if use_bf16 else 4

    LANE = 128
    D_pad = _round_up(D, LANE)
    C_pad = _round_up(cnn_hid, LANE)
    F_pad = _round_up(fc_hid, LANE)
    O_pad = _round_up(out_ft, LANE)

    if b_tile is None:
        b_tile = _default_b_tile()

    # Batch tiling: multiple of 8 (f32 sublane); force >= 2 tiles when the batch allows
    # it so the "parallel" batch axis can shard across both v7x TensorCores.
    B8 = _round_up(B, 8)
    n_b = _cdiv(B8, min(b_tile, B8))
    if n_b < 2 and B8 > 8:
        n_b = 2
    B_tile = _round_up(_cdiv(B8, n_b), 8)
    B_pad = n_b * B_tile

    # T chunking: largest divisor of T whose double-buffered x chunk stays under budget.
    per_t = B_tile * D_pad * itm * 2
    max_tc = max(1, t_chunk_budget_bytes // per_t)
    Tc = 1
    for cand in range(1, T + 1):
        if T % cand == 0 and cand <= max_tc:
            Tc = cand
    n_t = T // Tc

    def pad2(a, r, c, dtype=f32):
        a = a.astype(f32)
        a = jnp.pad(a, ((0, r - a.shape[0]), (0, c - a.shape[1])))
        return a.astype(dtype)

    # Fused GRU weight stack (gate blocks r | z | n_input | n_hidden), each block padded
    # to D_pad so in-kernel gate splits land on lane-group boundaries.
    zDD = jnp.zeros((D_pad, D_pad), f32)
    w_top = jnp.concatenate([pad2(wir, D_pad, D_pad), pad2(wiz, D_pad, D_pad),
                             pad2(win, D_pad, D_pad), zDD], axis=1)
    w_bot = jnp.concatenate([pad2(whr, D_pad, D_pad), pad2(whz, D_pad, D_pad),
                             zDD, pad2(whn, D_pad, D_pad)], axis=1)
    w_stack = jnp.concatenate([w_top, w_bot], axis=0).astype(mx_dtype)  # (2*Dp, 4*Dp)
    b_stack = jnp.concatenate([pad2(bir + bhr, 1, D_pad), pad2(biz + bhz, 1, D_pad),
                               pad2(bin_, 1, D_pad), pad2(bhn, 1, D_pad)], axis=1)

    # Station combine folded into a single matmul: replicate wfc per station.
    wfc_rep = pad2(jnp.tile(wfc.astype(f32), (num_stat, 1)), D_pad, C_pad, mx_dtype)
    bfc_p = pad2(bfc, 1, C_pad)
    w1_p = pad2(w1, C_pad, F_pad, mx_dtype)
    b1_p = pad2(b1, 1, F_pad)
    w2_p = pad2(w2, F_pad, O_pad, mx_dtype)
    b2_p = pad2(b2, 1, O_pad)

    # Inputs: concat + flatten stations; cast to the MXU dtype FIRST (halves the
    # transpose/pad HBM pass when bf16), then time-major + zero-pad to tiles.
    # (Folding the concat/transpose into the kernel as separate x/h K-blocks would
    #  remove this extra HBM pass entirely; left as wrapper-side prep here.)
    x_ = jnp.concatenate([x, h], axis=-1).reshape(B, T, D).astype(mx_dtype)
    x_tm = jnp.transpose(x_, (1, 0, 2))                          # (T, B, D)
    x_tm = jnp.pad(x_tm, ((0, 0), (0, B_pad - B), (0, D_pad - D)))

    # l normalization (global sum over ALL l entries, as in l / l.sum()).
    l_norm = (l / jnp.sum(l)).T.astype(f32)                      # (B, S)
    l_exp = jnp.repeat(l_norm, in_ft, axis=1)                    # (B, D) station weights
    l_exp = jnp.pad(l_exp, ((0, B_pad - B), (0, D_pad - D)))
    l_sum = jnp.pad(jnp.sum(l_norm, axis=1, keepdims=True),
                    ((0, B_pad - B), (0, 0)))                    # (B_pad, 1)

    # Explicit scoped-VMEM budget (double-buffered x chunk + weights + io + scratch).
    weight_bytes = (2 * D_pad * 4 * D_pad + D_pad * C_pad
                    + C_pad * F_pad + F_pad * O_pad) * itm
    bias_bytes = (4 * D_pad + C_pad + F_pad + O_pad) * 4
    io_bytes = (B_tile * D_pad + B_tile + B_tile * O_pad) * 4
    need = (Tc * B_tile * D_pad * itm * 2
            + (weight_bytes + bias_bytes + io_bytes) * 2
            + B_tile * D_pad * 4
            + B_tile * 4 * D_pad * 4 * 6)       # in-flight gate temporaries headroom
    vmem_limit = int(min(max(need + (4 << 20), 32 << 20), 110 << 20))

    def full2(a):
        # Constant-index weights; small relative to the x chunk, so left with the
        # default double buffering.
        return pl.BlockSpec(a.shape, lambda i, t: (0, 0))

    out_p = pl.pallas_call(
        _decoder_kernel,
        out_shape=jax.ShapeDtypeStruct((B_pad, O_pad), jnp.float32),
        grid_spec=pltpu.PrefetchScalarGridSpec(
            num_scalar_prefetch=0,
            grid=(B_pad // B_tile, n_t),
            in_specs=[
                pl.BlockSpec((Tc, B_tile, D_pad), lambda i, t: (t, i, 0)),  # x chunk
                pl.BlockSpec((B_tile, D_pad), lambda i, t: (i, 0)),         # l_exp
                pl.BlockSpec((B_tile, 1), lambda i, t: (i, 0)),             # l_sum
                full2(w_stack), full2(b_stack),
                full2(wfc_rep), full2(bfc_p),
                full2(w1_p), full2(b1_p), full2(w2_p), full2(b2_p),
            ],
            out_specs=pl.BlockSpec((B_tile, O_pad), lambda i, t: (i, 0)),
            scratch_shapes=[pltpu.VMEM((B_tile, D_pad), jnp.float32)],      # carried h
        ),
        compiler_params=pltpu.CompilerParams(
            dimension_semantics=("parallel", "arbitrary"),
            vmem_limit_bytes=vmem_limit),
    )(x_tm, l_exp, l_sum, w_stack, b_stack,
      wfc_rep, bfc_p, w1_p, b1_p, w2_p, b2_p)

    return out_p[:B, :out_ft]


def init_params(key, in_ft, out_ft, cnn_hid, fc_hid, num_stat):
    """Deterministic synthetic parameters (torch-like uniform(-1/sqrt(fan), ...))."""
    D = in_ft * num_stat
    ks = jax.random.split(key, 18)

    def u(k, shape, fan):
        return jax.random.uniform(k, shape, jnp.float32, -1.0, 1.0) / jnp.sqrt(fan)

    wir, wiz, win = u(ks[0], (D, D), D), u(ks[1], (D, D), D), u(ks[2], (D, D), D)
    whr, whz, whn = u(ks[3], (D, D), D), u(ks[4], (D, D), D), u(ks[5], (D, D), D)
    bir, biz, bin_ = u(ks[6], (1, D), D), u(ks[7], (1, D), D), u(ks[8], (1, D), D)
    bhr, bhz, bhn = u(ks[9], (1, D), D), u(ks[10], (1, D), D), u(ks[11], (1, D), D)
    wfc, bfc = u(ks[12], (in_ft, cnn_hid), in_ft), u(ks[13], (1, cnn_hid), in_ft)
    w1, b1 = u(ks[14], (cnn_hid, fc_hid), cnn_hid), u(ks[15], (1, fc_hid), cnn_hid)
    w2, b2 = u(ks[16], (fc_hid, out_ft), fc_hid), u(ks[17], (1, out_ft), fc_hid)
    return (wir, wiz, win, whr, whz, whn,
            bir, biz, bin_, bhr, bhz, bhn,
            wfc, bfc, w1, b1, w2, b2)


def reference_forward(x, h, l, params, *, num_stat, in_ft):
    """Pure-JAX transliteration of the PyTorch forward (for validation)."""
    (wir, wiz, win, whr, whz, whn,
     bir, biz, bin_, bhr, bhz, bhn,
     wfc, bfc, w1, b1, w2, b2) = params
    B, T, S, _ = x.shape
    D = S * in_ft

    l_ = l / l.sum()
    l_ = l_.T.reshape(B, -1, 1)                      # (B, S, 1)
    x_ = jnp.concatenate([x, h], axis=-1).reshape(B, T, D)

    hprev = jnp.zeros((B, D), jnp.float32)
    for t in range(T):
        xt = x_[:, t]
        r = jax.nn.sigmoid(xt @ wir + bir + hprev @ whr + bhr)
        z = jax.nn.sigmoid(xt @ wiz + biz + hprev @ whz + bhz)
        n = jnp.tanh(xt @ win + bin_ + r * (hprev @ whn + bhn))
        hprev = (1.0 - z) * n + z * hprev

    h_mat = hprev.reshape(B, S, in_ft)               # output[:, -1] reshaped
    ret = h_mat @ wfc + bfc                          # (B, S, cnn_hid)
    ret = jnp.transpose(ret, (0, 2, 1))              # (B, cnn_hid, S)
    ret = jnp.matmul(ret, l_).reshape(B, -1)         # (B, cnn_hid)
    ret = jnp.maximum(ret @ w1 + b1, 0.0)
    ret = ret @ w2 + b2
    return ret


if __name__ == "__main__":
    key = jax.random.PRNGKey(0)
    B, T = 2, 4
    num_stat = 6            # num_input_stat - 1
    in_ft = 8
    Fx, Fh = 5, 3           # Fx + Fh == in_ft
    out_ft = 4
    cnn_hid, fc_hid = 32, 16

    kx, kh, kl, kp = jax.random.split(key, 4)
    x = jax.random.normal(kx, (B, T, num_stat, Fx), jnp.float32)
    h = jax.random.normal(kh, (B, T, num_stat, Fh), jnp.float32)
    l = jax.random.uniform(kl, (num_stat, B), jnp.float32, minval=0.1, maxval=1.0)
    climate = jnp.zeros((B, T, 7), jnp.float32)  # unused by the forward pass

    params = init_params(kp, in_ft, out_ft, cnn_hid, fc_hid, num_stat)
    ref = reference_forward(x, h, l, params, num_stat=num_stat, in_ft=in_ft)

    # Exact-path check (f32 MXU operands).
    out_f32 = wocli_decoder_forward(x, h, l, climate, params,
                                    num_stat=num_stat, in_ft=in_ft, use_bf16=False)
    out_f32 = jax.block_until_ready(out_f32)
    assert out_f32.shape == (B, out_ft), out_f32.shape
    assert jnp.allclose(out_f32, ref, atol=2e-4, rtol=2e-4), (out_f32, ref)

    # Default fast path (bf16 MXU operands, f32 accumulation / gate math).
    out_bf16 = wocli_decoder_forward(x, h, l, climate, params,
                                     num_stat=num_stat, in_ft=in_ft, use_bf16=True)
    out_bf16 = jax.block_until_ready(out_bf16)
    assert out_bf16.shape == (B, out_ft), out_bf16.shape
    assert jnp.allclose(out_bf16, ref, atol=3e-2, rtol=3e-2), (out_bf16, ref)

    print("KERNEL_OK")
</pallas_src>

<mosaic_0001>
module attributes {stable_mosaic.version = 11 : i64} {
  func.func @_decoder_kernel(%arg0: i32, %arg1: i32, %arg2: memref<4x8x128xf32, #tpu.memory_space<vmem>>, %arg3: memref<8x128xf32, #tpu.memory_space<vmem>>, %arg4: memref<8x1xf32, #tpu.memory_space<vmem>>, %arg5: memref<256x512xf32, #tpu.memory_space<vmem>>, %arg6: memref<1x512xf32, #tpu.memory_space<vmem>>, %arg7: memref<128x128xf32, #tpu.memory_space<vmem>>, %arg8: memref<1x128xf32, #tpu.memory_space<vmem>>, %arg9: memref<128x128xf32, #tpu.memory_space<vmem>>, %arg10: memref<1x128xf32, #tpu.memory_space<vmem>>, %arg11: memref<128x128xf32, #tpu.memory_space<vmem>>, %arg12: memref<1x128xf32, #tpu.memory_space<vmem>>, %arg13: memref<8x128xf32, #tpu.memory_space<vmem>>, %arg14: memref<8x128xf32, #tpu.memory_space<vmem>>) attributes {dimension_semantics = [#tpu.dimension_semantics<parallel>, #tpu.dimension_semantics<arbitrary>], iteration_bounds = array<i64: 1, 1>, scalar_prefetch = 0 : i64, scratch_operands = 1 : i64, tpu.core_type = #tpu.core_type<tc>, window_params = [{transform_indices = @transform_0, window_bounds = array<i64: 4, 8, 128>}, {transform_indices = @transform_1, window_bounds = array<i64: 8, 128>}, {transform_indices = @transform_2, window_bounds = array<i64: 8, 1>}, {pipeline_mode = #tpu.pipeline_mode<synchronous>, transform_indices = @transform_3, window_bounds = array<i64: 256, 512>}, {pipeline_mode = #tpu.pipeline_mode<synchronous>, transform_indices = @transform_4, window_bounds = array<i64: 1, 512>}, {pipeline_mode = #tpu.pipeline_mode<synchronous>, transform_indices = @transform_5, window_bounds = array<i64: 128, 128>}, {pipeline_mode = #tpu.pipeline_mode<synchronous>, transform_indices = @transform_6, window_bounds = array<i64: 1, 128>}, {pipeline_mode = #tpu.pipeline_mode<synchronous>, transform_indices = @transform_7, window_bounds = array<i64: 128, 128>}, {pipeline_mode = #tpu.pipeline_mode<synchronous>, transform_indices = @transform_8, window_bounds = array<i64: 1, 128>}, {pipeline_mode = #tpu.pipeline_mode<synchronous>, transform_indices = @transform_9, window_bounds = array<i64: 128, 128>}, {pipeline_mode = #tpu.pipeline_mode<synchronous>, transform_indices = @transform_10, window_bounds = array<i64: 1, 128>}, {transform_indices = @transform_11, window_bounds = array<i64: 8, 128>}]} {
    %c0_i32 = arith.constant 0 : i32
    %0 = arith.cmpi eq, %arg1, %c0_i32 : i32
    %1 = arith.extui %0 : i1 to i32
    %c0_i32_0 = arith.constant 0 : i32
    %2 = arith.cmpi ne, %1, %c0_i32_0 : i32
    scf.if %2 {
      %cst_34 = arith.constant 0.000000e+00 : f32
      %124 = vector.broadcast %cst_34 : f32 to vector<8x128xf32>
      %c0_35 = arith.constant 0 : index
      %c0_36 = arith.constant 0 : index
      %125 = vector.load %arg14[%c0_35, %c0_36] : memref<8x128xf32, #tpu.memory_space<vmem>>, vector<8x128xf32>
      tpu.vector_store %arg14[%c0_35, %c0_36], %124 {strides = array<i32>} : memref<8x128xf32, #tpu.memory_space<vmem>>, vector<8x128xf32>,
    } else {
    }
    %c0 = arith.constant 0 : index
    %c0_1 = arith.constant 0 : index
    %3 = vector.load %arg5[%c0, %c0_1] : memref<256x512xf32, #tpu.memory_space<vmem>>, vector<256x512xf32>
    %c0_2 = arith.constant 0 : index
    %c0_3 = arith.constant 0 : index
    %4 = vector.load %arg6[%c0_2, %c0_3] : memref<1x512xf32, #tpu.memory_space<vmem>>, vector<1x512xf32>
    %5 = vector.shape_cast %4 : vector<1x512xf32> to vector<1x512xf32>
    %6 = vector.broadcast %5 : vector<1x512xf32> to vector<8x512xf32>
    %c0_4 = arith.constant 0 : index
    %c0_5 = arith.constant 0 : index
    %7 = vector.load %arg14[%c0_4, %c0_5] : memref<8x128xf32, #tpu.memory_space<vmem>>, vector<8x128xf32>
    %c0_i32_6 = arith.constant 0 : i32
    %8 = arith.index_cast %c0_i32_6 : i32 to index
    %c0_7 = arith.constant 0 : index
    %c0_8 = arith.constant 0 : index
    %9 = vector.load %arg2[%8, %c0_7, %c0_8] : memref<4x8x128xf32, #tpu.memory_space<vmem>>, vector<1x8x128xf32>
    %10 = vector.shape_cast %9 : vector<1x8x128xf32> to vector<8x128xf32>
    %11 = tpu.concatenate %10, %7 in 1 : vector<8x128xf32>, vector<8x128xf32> -> vector<8x256xf32>
    %cst = arith.constant dense<0.000000e+00> : vector<8x512xf32>
    %12 = tpu.matmul %11, %3, %cst {dimension_numbers = #tpu.dot_dimension_numbers<[1], [0], [0], [1], [0, 0, 1, 1], [], []>} : vector<8x256xf32>, vector<256x512xf32>, vector<8x512xf32> -> vector<8x512xf32>
    %13 = arith.addf %12, %6 : vector<8x512xf32>
    %14 = vector.extract_strided_slice %13 {offsets = [0, 0], sizes = [8, 128], strides = [1, 1]} : vector<8x512xf32> to vector<8x128xf32>
    %15 = arith.negf %14 : vector<8x128xf32>
    %16 = math.exp %15 : vector<8x128xf32>
    %cst_9 = arith.constant 1.000000e+00 : f32
    %17 = vector.broadcast %cst_9 : f32 to vector<8x128xf32>
    %18 = arith.addf %17, %16 : vector<8x128xf32>
    %19 = arith.divf %17, %18 : vector<8x128xf32>
    %20 = vector.extract_strided_slice %13 {offsets = [0, 128], sizes = [8, 128], strides = [1, 1]} : vector<8x512xf32> to vector<8x128xf32>
    %21 = arith.negf %20 : vector<8x128xf32>
    %22 = math.exp %21 : vector<8x128xf32>
    %cst_10 = arith.constant 1.000000e+00 : f32
    %23 = vector.broadcast %cst_10 : f32 to vector<8x128xf32>
    %24 = arith.addf %23, %22 : vector<8x128xf32>
    %25 = arith.divf %23, %24 : vector<8x128xf32>
    %26 = vector.extract_strided_slice %13 {offsets = [0, 256], sizes = [8, 128], strides = [1, 1]} : vector<8x512xf32> to vector<8x128xf32>
    %27 = vector.extract_strided_slice %13 {offsets = [0, 384], sizes = [8, 128], strides = [1, 1]} : vector<8x512xf32> to vector<8x128xf32>
    %28 = arith.mulf %19, %27 : vector<8x128xf32>
    %29 = arith.addf %26, %28 : vector<8x128xf32>
    %30 = math.tanh %29 : vector<8x128xf32>
    %cst_11 = arith.constant 1.000000e+00 : f32
    %31 = vector.broadcast %cst_11 : f32 to vector<8x128xf32>
    %32 = arith.subf %31, %25 : vector<8x128xf32>
    %33 = arith.mulf %32, %30 : vector<8x128xf32>
    %34 = arith.mulf %25, %7 : vector<8x128xf32>
    %35 = arith.addf %33, %34 : vector<8x128xf32>
    %c1_i32 = arith.constant 1 : i32
    %36 = arith.index_cast %c1_i32 : i32 to index
    %c0_12 = arith.constant 0 : index
    %c0_13 = arith.constant 0 : index
    %37 = vector.load %arg2[%36, %c0_12, %c0_13] : memref<4x8x128xf32, #tpu.memory_space<vmem>>, vector<1x8x128xf32>
    %38 = vector.shape_cast %37 : vector<1x8x128xf32> to vector<8x128xf32>
    %39 = tpu.concatenate %38, %35 in 1 : vector<8x128xf32>, vector<8x128xf32> -> vector<8x256xf32>
    %cst_14 = arith.constant dense<0.000000e+00> : vector<8x512xf32>
    %40 = tpu.matmul %39, %3, %cst_14 {dimension_numbers = #tpu.dot_dimension_numbers<[1], [0], [0], [1], [0, 0, 1, 1], [], []>} : vector<8x256xf32>, vector<256x512xf32>, vector<8x512xf32> -> vector<8x512xf32>
    %41 = arith.addf %40, %6 : vector<8x512xf32>
    %42 = vector.extract_strided_slice %41 {offsets = [0, 0], sizes = [8, 128], strides = [1, 1]} : vector<8x512xf32> to vector<8x128xf32>
    %43 = arith.negf %42 : vector<8x128xf32>
    %44 = math.exp %43 : vector<8x128xf32>
    %cst_15 = arith.constant 1.000000e+00 : f32
    %45 = vector.broadcast %cst_15 : f32 to vector<8x128xf32>
    %46 = arith.addf %45, %44 : vector<8x128xf32>
    %47 = arith.divf %45, %46 : vector<8x128xf32>
    %48 = vector.extract_strided_slice %41 {offsets = [0, 128], sizes = [8, 128], strides = [1, 1]} : vector<8x512xf32> to vector<8x128xf32>
    %49 = arith.negf %48 : vector<8x128xf32>
    %50 = math.exp %49 : vector<8x128xf32>
    %cst_16 = arith.constant 1.000000e+00 : f32
    %51 = vector.broadcast %cst_16 : f32 to vector<8x128xf32>
    %52 = arith.addf %51, %50 : vector<8x128xf32>
    %53 = arith.divf %51, %52 : vector<8x128xf32>
    %54 = vector.extract_strided_slice %41 {offsets = [0, 256], sizes = [8, 128], strides = [1, 1]} : vector<8x512xf32> to vector<8x128xf32>
    %55 = vector.extract_strided_slice %41 {offsets = [0, 384], sizes = [8, 128], strides = [1, 1]} : vector<8x512xf32> to vector<8x128xf32>
    %56 = arith.mulf %47, %55 : vector<8x128xf32>
    %57 = arith.addf %54, %56 : vector<8x128xf32>
    %58 = math.tanh %57 : vector<8x128xf32>
    %cst_17 = arith.constant 1.000000e+00 : f32
    %59 = vector.broadcast %cst_17 : f32 to vector<8x128xf32>
    %60 = arith.subf %59, %53 : vector<8x128xf32>
    %61 = arith.mulf %60, %58 : vector<8x128xf32>
    %62 = arith.mulf %53, %35 : vector<8x128xf32>
    %63 = arith.addf %61, %62 : vector<8x128xf32>
    %c2_i32 = arith.constant 2 : i32
    %64 = arith.index_cast %c2_i32 : i32 to index
    %c0_18 = arith.constant 0 : index
    %c0_19 = arith.constant 0 : index
    %65 = vector.load %arg2[%64, %c0_18, %c0_19] : memref<4x8x128xf32, #tpu.memory_space<vmem>>, vector<1x8x128xf32>
    %66 = vector.shape_cast %65 : vector<1x8x128xf32> to vector<8x128xf32>
    %67 = tpu.concatenate %66, %63 in 1 : vector<8x128xf32>, vector<8x128xf32> -> vector<8x256xf32>
    %cst_20 = arith.constant dense<0.000000e+00> : vector<8x512xf32>
    %68 = tpu.matmul %67, %3, %cst_20 {dimension_numbers = #tpu.dot_dimension_numbers<[1], [0], [0], [1], [0, 0, 1, 1], [], []>} : vector<8x256xf32>, vector<256x512xf32>, vector<8x512xf32> -> vector<8x512xf32>
    %69 = arith.addf %68, %6 : vector<8x512xf32>
    %70 = vector.extract_strided_slice %69 {offsets = [0, 0], sizes = [8, 128], strides = [1, 1]} : vector<8x512xf32> to vector<8x128xf32>
    %71 = arith.negf %70 : vector<8x128xf32>
    %72 = math.exp %71 : vector<8x128xf32>
    %cst_21 = arith.constant 1.000000e+00 : f32
    %73 = vector.broadcast %cst_21 : f32 to vector<8x128xf32>
    %74 = arith.addf %73, %72 : vector<8x128xf32>
    %75 = arith.divf %73, %74 : vector<8x128xf32>
    %76 = vector.extract_strided_slice %69 {offsets = [0, 128], sizes = [8, 128], strides = [1, 1]} : vector<8x512xf32> to vector<8x128xf32>
    %77 = arith.negf %76 : vector<8x128xf32>
    %78 = math.exp %77 : vector<8x128xf32>
    %cst_22 = arith.constant 1.000000e+00 : f32
    %79 = vector.broadcast %cst_22 : f32 to vector<8x128xf32>
    %80 = arith.addf %79, %78 : vector<8x128xf32>
    %81 = arith.divf %79, %80 : vector<8x128xf32>
    %82 = vector.extract_strided_slice %69 {offsets = [0, 256], sizes = [8, 128], strides = [1, 1]} : vector<8x512xf32> to vector<8x128xf32>
    %83 = vector.extract_strided_slice %69 {offsets = [0, 384], sizes = [8, 128], strides = [1, 1]} : vector<8x512xf32> to vector<8x128xf32>
    %84 = arith.mulf %75, %83 : vector<8x128xf32>
    %85 = arith.addf %82, %84 : vector<8x128xf32>
    %86 = math.tanh %85 : vector<8x128xf32>
    %cst_23 = arith.constant 1.000000e+00 : f32
    %87 = vector.broadcast %cst_23 : f32 to vector<8x128xf32>
    %88 = arith.subf %87, %81 : vector<8x128xf32>
    %89 = arith.mulf %88, %86 : vector<8x128xf32>
    %90 = arith.mulf %81, %63 : vector<8x128xf32>
    %91 = arith.addf %89, %90 : vector<8x128xf32>
    %c3_i32 = arith.constant 3 : i32
    %92 = arith.index_cast %c3_i32 : i32 to index
    %c0_24 = arith.constant 0 : index
    %c0_25 = arith.constant 0 : index
    %93 = vector.load %arg2[%92, %c0_24, %c0_25] : memref<4x8x128xf32, #tpu.memory_space<vmem>>, vector<1x8x128xf32>
    %94 = vector.shape_cast %93 : vector<1x8x128xf32> to vector<8x128xf32>
    %95 = tpu.concatenate %94, %91 in 1 : vector<8x128xf32>, vector<8x128xf32> -> vector<8x256xf32>
    %cst_26 = arith.constant dense<0.000000e+00> : vector<8x512xf32>
    %96 = tpu.matmul %95, %3, %cst_26 {dimension_numbers = #tpu.dot_dimension_numbers<[1], [0], [0], [1], [0, 0, 1, 1], [], []>} : vector<8x256xf32>, vector<256x512xf32>, vector<8x512xf32> -> vector<8x512xf32>
    %97 = arith.addf %96, %6 : vector<8x512xf32>
    %98 = vector.extract_strided_slice %97 {offsets = [0, 0], sizes = [8, 128], strides = [1, 1]} : vector<8x512xf32> to vector<8x128xf32>
    %99 = arith.negf %98 : vector<8x128xf32>
    %100 = math.exp %99 : vector<8x128xf32>
    %cst_27 = arith.constant 1.000000e+00 : f32
    %101 = vector.broadcast %cst_27 : f32 to vector<8x128xf32>
    %102 = arith.addf %101, %100 : vector<8x128xf32>
    %103 = arith.divf %101, %102 : vector<8x128xf32>
    %104 = vector.extract_strided_slice %97 {offsets = [0, 128], sizes = [8, 128], strides = [1, 1]} : vector<8x512xf32> to vector<8x128xf32>
    %105 = arith.negf %104 : vector<8x128xf32>
    %106 = math.exp %105 : vector<8x128xf32>
    %cst_28 = arith.constant 1.000000e+00 : f32
    %107 = vector.broadcast %cst_28 : f32 to vector<8x128xf32>
    %108 = arith.addf %107, %106 : vector<8x128xf32>
    %109 = arith.divf %107, %108 : vector<8x128xf32>
    %110 = vector.extract_strided_slice %97 {offsets = [0, 256], sizes = [8, 128], strides = [1, 1]} : vector<8x512xf32> to vector<8x128xf32>
    %111 = vector.extract_strided_slice %97 {offsets = [0, 384], sizes = [8, 128], strides = [1, 1]} : vector<8x512xf32> to vector<8x128xf32>
    %112 = arith.mulf %103, %111 : vector<8x128xf32>
    %113 = arith.addf %110, %112 : vector<8x128xf32>
    %114 = math.tanh %113 : vector<8x128xf32>
    %cst_29 = arith.constant 1.000000e+00 : f32
    %115 = vector.broadcast %cst_29 : f32 to vector<8x128xf32>
    %116 = arith.subf %115, %109 : vector<8x128xf32>
    %117 = arith.mulf %116, %114 : vector<8x128xf32>
    %118 = arith.mulf %109, %91 : vector<8x128xf32>
    %119 = arith.addf %117, %118 : vector<8x128xf32>
    %c4_i32 = arith.constant 4 : i32
    %c0_30 = arith.constant 0 : index
    %c0_31 = arith.constant 0 : index
    %120 = vector.load %arg14[%c0_30, %c0_31] : memref<8x128xf32, #tpu.memory_space<vmem>>, vector<8x128xf32>
    tpu.vector_store %arg14[%c0_30, %c0_31], %119 {strides = array<i32>} : memref<8x128xf32, #tpu.memory_space<vmem>>, vector<8x128xf32>,
    %c0_i32_32 = arith.constant 0 : i32
    %121 = arith.cmpi eq, %arg1, %c0_i32_32 : i32
    %122 = arith.extui %121 : i1 to i32
    %c0_i32_33 = arith.constant 0 : i32
    %123 = arith.cmpi ne, %122, %c0_i32_33 : i32
    scf.if %123 {
      %c0_34 = arith.constant 0 : index
      %c0_35 = arith.constant 0 : index
      %124 = vector.load %arg3[%c0_34, %c0_35] : memref<8x128xf32, #tpu.memory_space<vmem>>, vector<8x128xf32>
      %125 = arith.mulf %119, %124 : vector<8x128xf32>
      %c0_36 = arith.constant 0 : index
      %c0_37 = arith.constant 0 : index
      %126 = vector.load %arg7[%c0_36, %c0_37] : memref<128x128xf32, #tpu.memory_space<vmem>>, vector<128x128xf32>
      %cst_38 = arith.constant dense<0.000000e+00> : vector<8x128xf32>
      %127 = tpu.matmul %125, %126, %cst_38 {dimension_numbers = #tpu.dot_dimension_numbers<[1], [0], [0], [1], [0, 0, 1, 1], [], []>} : vector<8x128xf32>, vector<128x128xf32>, vector<8x128xf32> -> vector<8x128xf32>
      %c0_39 = arith.constant 0 : index
      %c0_40 = arith.constant 0 : index
      %128 = vector.load %arg4[%c0_39, %c0_40] : memref<8x1xf32, #tpu.memory_space<vmem>>, vector<8x1xf32>
      %c0_41 = arith.constant 0 : index
      %c0_42 = arith.constant 0 : index
      %129 = vector.load %arg8[%c0_41, %c0_42] : memref<1x128xf32, #tpu.memory_space<vmem>>, vector<1x128xf32>
      %130 = vector.broadcast %128 : vector<8x1xf32> to vector<8x128xf32>
      %131 = vector.broadcast %129 : vector<1x128xf32> to vector<8x128xf32>
      %132 = arith.mulf %130, %131 : vector<8x128xf32>
      %133 = arith.addf %127, %132 : vector<8x128xf32>
      %c0_43 = arith.constant 0 : index
      %c0_44 = arith.constant 0 : index
      %134 = vector.load %arg9[%c0_43, %c0_44] : memref<128x128xf32, #tpu.memory_space<vmem>>, vector<128x128xf32>
      %cst_45 = arith.constant dense<0.000000e+00> : vector<8x128xf32>
      %135 = tpu.matmul %133, %134, %cst_45 {dimension_numbers = #tpu.dot_dimension_numbers<[1], [0], [0], [1], [0, 0, 1, 1], [], []>} : vector<8x128xf32>, vector<128x128xf32>, vector<8x128xf32> -> vector<8x128xf32>
      %c0_46 = arith.constant 0 : index
      %c0_47 = arith.constant 0 : index
      %136 = vector.load %arg10[%c0_46, %c0_47] : memref<1x128xf32, #tpu.memory_space<vmem>>, vector<1x128xf32>
      %137 = vector.broadcast %136 : vector<1x128xf32> to vector<8x128xf32>
      %138 = arith.addf %135, %137 : vector<8x128xf32>
      %cst_48 = arith.constant 0.000000e+00 : f32
      %139 = vector.broadcast %cst_48 : f32 to vector<8x128xf32>
      %140 = arith.maximumf %138, %139 : vector<8x128xf32>
      %c0_49 = arith.constant 0 : index
      %c0_50 = arith.constant 0 : index
      %141 = vector.load %arg11[%c0_49, %c0_50] : memref<128x128xf32, #tpu.memory_space<vmem>>, vector<128x128xf32>
      %cst_51 = arith.constant dense<0.000000e+00> : vector<8x128xf32>
      %142 = tpu.matmul %140, %141, %cst_51 {dimension_numbers = #tpu.dot_dimension_numbers<[1], [0], [0], [1], [0, 0, 1, 1], [], []>} : vector<8x128xf32>, vector<128x128xf32>, vector<8x128xf32> -> vector<8x128xf32>
      %c0_52 = arith.constant 0 : index
      %c0_53 = arith.constant 0 : index
      %143 = vector.load %arg12[%c0_52, %c0_53] : memref<1x128xf32, #tpu.memory_space<vmem>>, vector<1x128xf32>
      %144 = vector.broadcast %143 : vector<1x128xf32> to vector<8x128xf32>
      %145 = arith.addf %142, %144 : vector<8x128xf32>
      %c0_54 = arith.constant 0 : index
      %c0_55 = arith.constant 0 : index
      %146 = vector.load %arg13[%c0_54, %c0_55] : memref<8x128xf32, #tpu.memory_space<vmem>>, vector<8x128xf32>
      tpu.vector_store %arg13[%c0_54, %c0_55], %145 {strides = array<i32>} : memref<8x128xf32, #tpu.memory_space<vmem>>, vector<8x128xf32>,
    } else {
    }
    return
  }
  func.func @transform_0(%arg0: i32, %arg1: i32) -> (i32, i32, i32) {
    %c0_i32 = arith.constant 0 : i32
    %c0_i32_0 = arith.constant 0 : i32
    return %arg1, %arg0, %c0_i32 : i32, i32, i32
  }
  func.func @transform_1(%arg0: i32, %arg1: i32) -> (i32, i32) {
    %c0_i32 = arith.constant 0 : i32
    %c0_i32_0 = arith.constant 0 : i32
    return %arg0, %c0_i32 : i32, i32
  }
  func.func @transform_2(%arg0: i32, %arg1: i32) -> (i32, i32) {
    %c0_i32 = arith.constant 0 : i32
    %c0_i32_0 = arith.constant 0 : i32
    return %arg0, %c0_i32 : i32, i32
  }
  func.func @transform_3(%arg0: i32, %arg1: i32) -> (i32, i32) {
    %c0_i32 = arith.constant 0 : i32
    %c0_i32_0 = arith.constant 0 : i32
    %c0_i32_1 = arith.constant 0 : i32
    return %c0_i32, %c0_i32_0 : i32, i32
  }
  func.func @transform_4(%arg0: i32, %arg1: i32) -> (i32, i32) {
    %c0_i32 = arith.constant 0 : i32
    %c0_i32_0 = arith.constant 0 : i32
    %c0_i32_1 = arith.constant 0 : i32
    return %c0_i32, %c0_i32_0 : i32, i32
  }
  func.func @transform_5(%arg0: i32, %arg1: i32) -> (i32, i32) {
    %c0_i32 = arith.constant 0 : i32
    %c0_i32_0 = arith.constant 0 : i32
    %c0_i32_1 = arith.constant 0 : i32
    return %c0_i32, %c0_i32_0 : i32, i32
  }
  func.func @transform_6(%arg0: i32, %arg1: i32) -> (i32, i32) {
    %c0_i32 = arith.constant 0 : i32
    %c0_i32_0 = arith.constant 0 : i32
    %c0_i32_1 = arith.constant 0 : i32
    return %c0_i32, %c0_i32_0 : i32, i32
  }
  func.func @transform_7(%arg0: i32, %arg1: i32) -> (i32, i32) {
    %c0_i32 = arith.constant 0 : i32
    %c0_i32_0 = arith.constant 0 : i32
    %c0_i32_1 = arith.constant 0 : i32
    return %c0_i32, %c0_i32_0 : i32, i32
  }
  func.func @transform_8(%arg0: i32, %arg1: i32) -> (i32, i32) {
    %c0_i32 = arith.constant 0 : i32
    %c0_i32_0 = arith.constant 0 : i32
    %c0_i32_1 = arith.constant 0 : i32
    return %c0_i32, %c0_i32_0 : i32, i32
  }
  func.func @transform_9(%arg0: i32, %arg1: i32) -> (i32, i32) {
    %c0_i32 = arith.constant 0 : i32
    %c0_i32_0 = arith.constant 0 : i32
    %c0_i32_1 = arith.constant 0 : i32
    return %c0_i32, %c0_i32_0 : i32, i32
  }
  func.func @transform_10(%arg0: i32, %arg1: i32) -> (i32, i32) {
    %c0_i32 = arith.constant 0 : i32
    %c0_i32_0 = arith.constant 0 : i32
    %c0_i32_1 = arith.constant 0 : i32
    return %c0_i32, %c0_i32_0 : i32, i32
  }
  func.func @transform_11(%arg0: i32, %arg1: i32) -> (i32, i32) {
    %c0_i32 = arith.constant 0 : i32
    %c0_i32_0 = arith.constant 0 : i32
    return %arg0, %c0_i32 : i32, i32
  }
}

</mosaic_0001>

<bundles_post_ra>
// kernel: tpu_custom_call.1
= control target key start
LH: loop header
LB: loop body
LE: loop exit
PB: predicated region body
PF: predicated region fallthrough
CT: control target
= control target key end

     0   :  { %16 = vsyncpa [#allocation4], 0  ;;  %s2468_s0 = inlined_call_operand.hbm [shape: f32[4,8,128], index: 0, kind: input, shape index: {}]   ;;  %s2469_s1 = inlined_call_operand.vmem [shape: f32[8,128], index: 1, kind: input, shape index: {}]   ;;  %s2470_s2 = inlined_call_operand.vmem [shape: f32[8,1], index: 2, kind: input, shape index: {}]   ;;  %s2471_s3 = inlined_call_operand.hbm [shape: f32[256,512], index: 3, kind: input, shape index: {}]   ;;  %s2472_s4 = inlined_call_operand.hbm [shape: f32[1,512], index: 4, kind: input, shape index: {}]   ;;  %s2473_s5 = inlined_call_operand.hbm [shape: f32[128,128], index: 5, kind: input, shape index: {}]   ;;  %s2474_s6 = inlined_call_operand.vmem [shape: f32[1,128], index: 6, kind: input, shape index: {}]   ;;  %s2475_s7 = inlined_call_operand.hbm [shape: f32[128,128], index: 7, kind: input, shape index: {}]   ;;  %s2476_s8 = inlined_call_operand.vmem [shape: f32[1,128], index: 8, kind: input, shape index: {}]   ;;  %s2477_s9 = inlined_call_operand.hbm [shape: f32[128,128], index: 9, kind: input, shape index: {}]   ;;  %s2478_s10 = inlined_call_operand.vmem [shape: f32[1,128], index: 10, kind: input, shape index: {}]   ;;  %s2479_s11 = inlined_call_operand.hbm [shape: f32[8,128], index: 11, kind: output, shape index: {}]  }
   0x1   :  { %17 = vsyncpa [#allocation7], 0 }
   0x2   :  { %18 = vsyncpa [#allocation10], 0 }
   0x3   :  { %19 = vsyncpa [#allocation13], 0  ;;  %s42_s19 = sshll.u32 %s2471_s3, 4  ;;  %s43_s19 = int_to_ptr.hbm [resolvable:$true] %s42_s19 }
   0x4   :  { %20 = vsyncpa [#allocation5], 0  ;;  %s1626_s20 = smov [#allocation6]   ;;  %s1627_s22 = smov 512  }
   0x5   :  { %s44_s21 = sshll.u32 %s1626_s20, 4  ;;  %s1628_s23 = smov 32   ;;  %s45_s21 = int_to_ptr.vmem [resolvable:$true] %s44_s21 }
   0x6   :  { %50 = dma.hbm_to_vmem [thread:$0]  %s43_s19, 16384, %s45_s21, [#allocation7], %s1627_s22, %s1627_s22, %s1628_s23  }
   0x7   :  { %s66_s26 = sshll.u32 %s2473_s5, 4  ;;  %s1629_s27 = smov [#allocation9]   ;;  %s67_s26 = int_to_ptr.hbm [resolvable:$true] %s66_s26 }
   0x8   :  { %s68_s28 = sshll.u32 %s1629_s27, 4  ;;  %s25_s12 = sshll.u32 %s2468_s0, 4  ;;  %s69_s28 = int_to_ptr.vmem [resolvable:$true] %s68_s28  ;;  %s26_s12 = int_to_ptr.hbm [resolvable:$true] %s25_s12 }
   0x9   :  { %s1630_s3 = smov 128   ;;  %s1631_s13 = smov 8  }
   0xa   :  { %74 = dma.hbm_to_vmem [thread:$0]  %s67_s26, 2048, %s69_s28, [#allocation10], %s1630_s3, %s1630_s3, %s1631_s13  }
   0xb   :  { %s56_s16 = sshll.u32 %s2472_s4, 4  ;;  %s1632_s17 = smov [#allocation3]   ;;  %s57_s16 = int_to_ptr.hbm [resolvable:$true] %s56_s16 }
   0xc   :  { %s27_s18 = sshll.u32 %s1632_s17, 4  ;;  %s1633_s5 = smov [#allocation8]   ;;  %s28_s18 = int_to_ptr.vmem [resolvable:$true] %s27_s18 }
   0xd   :  { %33 = dma.hbm_to_vmem [thread:$0]  %s26_s12, 512, %s28_s18, [#allocation4], %s1630_s3, %s1630_s3, %s1631_s13  }
   0xe   :  { %s58_s19 = sshll.u32 %s1633_s5, 4  ;;  %s81_s0 = sshll.u32 %s2475_s7, 4  ;;  %s59_s19 = int_to_ptr.vmem [resolvable:$true] %s58_s19  ;;  %s82_s0 = int_to_ptr.hbm [resolvable:$true] %s81_s0 }
   0xf   :  { %61 = dma.hbm_to_vmem [thread:$0]  %s57_s16, 64, %s59_s19, [#allocation7]  }
  0x10   :  { %s96_s24 = sshll.u32 %s2477_s9, 4  ;;  %s1634_s25 = smov [#allocation11]   ;;  %s97_s24 = int_to_ptr.hbm [resolvable:$true] %s96_s24 }
  0x11   :  { %s83_s4 = sshll.u32 %s1634_s25, 4  ;;  %s1635_s26 = smov [#allocation12]   ;;  %s84_s4 = int_to_ptr.vmem [resolvable:$true] %s83_s4 }
  0x12   :  { %89 = dma.hbm_to_vmem [thread:$0]  %s82_s0, 2048, %s84_s4, [#allocation10], %s1630_s3, %s1630_s3, %s1631_s13  }
  0x13   :  { %s98_s27 = sshll.u32 %s1635_s26, 4  ;;  %s99_s27 = int_to_ptr.vmem [resolvable:$true] %s98_s27 }
  0x14   :  { %104 = dma.hbm_to_vmem [thread:$0]  %s97_s24, 2048, %s99_s27, [#allocation13], %s1630_s3, %s1630_s3, %s1631_s13  }
  0x15   :  { %1616 = dma.done.wait [#allocation4], 512  }
  0x16   :  { %1617 = vsyncadd [#allocation4], 4294966784 }
  0x17   :  { %1618 = dma.done.wait [#allocation7], 16448  }
  0x18   :  { %1619 = vsyncadd [#allocation7], 4294950848 }
  0x19   :  { %1620 = dma.done.wait [#allocation10], 4096  }
  0x1a   :  { %1621 = vsyncadd [#allocation10], 4294963200 }
  0x1b   :  { %1622 = dma.done.wait [#allocation13], 2048  }
  0x1c   :  { %1623 = vsyncadd [#allocation13], 4294965248  ;;  %v1717_v0 = vld [vmem:[#allocation6 + $0x1e0] sm:$0xff]  ;;  %v1719_v1 = vld [vmem:[#allocation6 + $0x1e8] sm:$0xff]  ;;  %s1638_s13 = smov [#allocation14]   ;;  %s1244_s17 = sshll.u32 %s2479_s11, 4  ;;  %s1245_s17 = int_to_ptr.hbm [resolvable:$true] %s1244_s17 }
  0x1d   :  { %v1721_v2 = vld [vmem:[#allocation6 + $0x1c0] sm:$0xff]  ;;  %276 = vmatpush.msra.mxu0 %v1717_v0  ;;  %316 = vmatpush.msra.mxu2 %v1719_v1  ;;  %v1727_v4 = vld [vmem:[#allocation6 + $0x1c8] sm:$0xff]  ;;  %v1903_v63 = vld [vmem:[#allocation6 + $0x1f8] sm:$0xff]  ;;  %s1242_s14 = sshll.u32 %s1638_s13, 4  ;;  %s1243_s14 = int_to_ptr.vmem [resolvable:$true] %s1242_s14 }
  0x1e   :  { %v1725_v3 = vld [vmem:[#allocation6 + $0x3e0] sm:$0xff]  ;;  %v1729_v5 = vld [vmem:[#allocation6 + $0x3e8] sm:$0xff]  ;;  %2680 = vst [vmem:[#allocation52_spill] sm:$0xff] %v1903_v63 }
  0x1f   :  { %296 = vmatpush.msra.mxu1 %v1725_v3  ;;  %336 = vmatpush.msra.mxu3 %v1729_v5  ;;  %v1733_v6 = vld [vmem:[#allocation6 + $0x1a0] sm:$0xff]  ;;  %v1737_v8 = vld [vmem:[#allocation6 + $0x1a8] sm:$0xff] }
  0x20   :  { %v1735_v7 = vld [vmem:[#allocation6 + $0x3c0] sm:$0xff]  ;;  %277 = vmatpush.msra.mxu0 %v1721_v2  ;;  %317 = vmatpush.msra.mxu2 %v1727_v4  ;;  %v1741_v9 = vld [vmem:[#allocation6 + $0x3c8] sm:$0xff] }
  0x21   :  { %v1743_v10 = vld [vmem:[#allocation6 + $0x3a0] sm:$0xff]  ;;  %297 = vmatpush.msra.mxu1 %v1735_v7  ;;  %337 = vmatpush.msra.mxu3 %v1741_v9  ;;  %v1749_v12 = vld [vmem:[#allocation6 + $0x188] sm:$0xff] }
  0x22   :  { %2648 = vst [vmem:[#allocation20_spill] sm:$0xff] %v1743_v10  ;;  %v1747_v11 = vld [vmem:[#allocation6 + $0x180] sm:$0xff]  ;;  %v1751_v13 = vld [vmem:[#allocation6 + $0x3a8] sm:$0xff]  ;;  %278 = vmatpush.msra.mxu0 %v1733_v6  ;;  %318 = vmatpush.msra.mxu2 %v1737_v8 }
  0x23   :  { %2649 = vst [vmem:[#allocation21_spill] sm:$0xff] %v1751_v13  ;;  %v1755_v14 = vld [vmem:[#allocation6 + $0x380] sm:$0xff]  ;;  %v1757_v15 = vld [vmem:[#allocation6 + $0x388] sm:$0xff]  ;;  %298 = vmatpush.msra.mxu1 %v1743_v10  ;;  %338 = vmatpush.msra.mxu3 %v1751_v13 }
  0x24   :  { %2650 = vst [vmem:[#allocation22_spill] sm:$0xff] %v1755_v14  ;;  %v1761_v16 = vld [vmem:[#allocation6 + $0x160] sm:$0xff]  ;;  %v1763_v17 = vld [vmem:[#allocation6 + $0x168] sm:$0xff]  ;;  %279 = vmatpush.msra.mxu0 %v1747_v11  ;;  %319 = vmatpush.msra.mxu2 %v1749_v12 }
  0x25   :  { %2651 = vst [vmem:[#allocation23_spill] sm:$0xff] %v1757_v15  ;;  %v1767_v18 = vld [vmem:[#allocation6 + $0x360] sm:$0xff]  ;;  %v1769_v19 = vld [vmem:[#allocation6 + $0x368] sm:$0xff]  ;;  %299 = vmatpush.msra.mxu1 %v1755_v14  ;;  %339 = vmatpush.msra.mxu3 %v1757_v15 }
  0x26   :  { %2652 = vst [vmem:[#allocation24_spill] sm:$0xff] %v1767_v18  ;;  %v1773_v20 = vld [vmem:[#allocation6 + $0x140] sm:$0xff]  ;;  %v1775_v21 = vld [vmem:[#allocation6 + $0x148] sm:$0xff]  ;;  %280 = vmatpush.msra.mxu0 %v1761_v16  ;;  %320 = vmatpush.msra.mxu2 %v1763_v17 }
  0x27   :  { %2653 = vst [vmem:[#allocation25_spill] sm:$0xff] %v1769_v19  ;;  %v1779_v22 = vld [vmem:[#allocation6 + $0x340] sm:$0xff]  ;;  %v1781_v23 = vld [vmem:[#allocation6 + $0x348] sm:$0xff]  ;;  %300 = vmatpush.msra.mxu1 %v1767_v18  ;;  %340 = vmatpush.msra.mxu3 %v1769_v19 }
  0x28   :  { %2654 = vst [vmem:[#allocation26_spill] sm:$0xff] %v1779_v22  ;;  %v1785_v24 = vld [vmem:[#allocation6 + $0x120] sm:$0xff]  ;;  %v1787_v25 = vld [vmem:[#allocation6 + $0x128] sm:$0xff]  ;;  %281 = vmatpush.msra.mxu0 %v1773_v20  ;;  %321 = vmatpush.msra.mxu2 %v1775_v21 }
  0x29   :  { %2655 = vst [vmem:[#allocation27_spill] sm:$0xff] %v1781_v23  ;;  %v1791_v26 = vld [vmem:[#allocation6 + $0x320] sm:$0xff]  ;;  %v1793_v27 = vld [vmem:[#allocation6 + $0x328] sm:$0xff]  ;;  %301 = vmatpush.msra.mxu1 %v1779_v22  ;;  %341 = vmatpush.msra.mxu3 %v1781_v23 }
  0x2a   :  { %2656 = vst [vmem:[#allocation28_spill] sm:$0xff] %v1791_v26  ;;  %v1797_v28 = vld [vmem:[#allocation6 + $0x100] sm:$0xff]  ;;  %v1799_v29 = vld [vmem:[#allocation6 + $0x108] sm:$0xff]  ;;  %282 = vmatpush.msra.mxu0 %v1785_v24  ;;  %322 = vmatpush.msra.mxu2 %v1787_v25 }
  0x2b   :  { %2657 = vst [vmem:[#allocation29_spill] sm:$0xff] %v1793_v27  ;;  %v1803_v30 = vld [vmem:[#allocation6 + $0x300] sm:$0xff]  ;;  %v1805_v31 = vld [vmem:[#allocation6 + $0x308] sm:$0xff]  ;;  %302 = vmatpush.msra.mxu1 %v1791_v26  ;;  %342 = vmatpush.msra.mxu3 %v1793_v27 }
  0x2c   :  { %2658 = vst [vmem:[#allocation30_spill] sm:$0xff] %v1803_v30  ;;  %v1809_v32 = vld [vmem:[#allocation6 + $0xe0] sm:$0xff]  ;;  %v1811_v33 = vld [vmem:[#allocation6 + $0xe8] sm:$0xff]  ;;  %283 = vmatpush.msra.mxu0 %v1797_v28  ;;  %323 = vmatpush.msra.mxu2 %v1799_v29 }
  0x2d   :  { %2659 = vst [vmem:[#allocation31_spill] sm:$0xff] %v1805_v31  ;;  %v1815_v34 = vld [vmem:[#allocation6 + $0x2e0] sm:$0xff]  ;;  %v1817_v35 = vld [vmem:[#allocation6 + $0x2e8] sm:$0xff]  ;;  %303 = vmatpush.msra.mxu1 %v1803_v30  ;;  %343 = vmatpush.msra.mxu3 %v1805_v31 }
  0x2e   :  { %2660 = vst [vmem:[#allocation32_spill] sm:$0xff] %v1815_v34  ;;  %v1821_v36 = vld [vmem:[#allocation6 + $0xc0] sm:$0xff]  ;;  %v1823_v37 = vld [vmem:[#allocation6 + $0xc8] sm:$0xff]  ;;  %284 = vmatpush.msra.mxu0 %v1809_v32  ;;  %324 = vmatpush.msra.mxu2 %v1811_v33 }
  0x2f   :  { %2661 = vst [vmem:[#allocation33_spill] sm:$0xff] %v1817_v35  ;;  %v1827_v38 = vld [vmem:[#allocation6 + $0x2c0] sm:$0xff]  ;;  %v1829_v39 = vld [vmem:[#allocation6 + $0x2c8] sm:$0xff]  ;;  %304 = vmatpush.msra.mxu1 %v1815_v34  ;;  %344 = vmatpush.msra.mxu3 %v1817_v35 }
  0x30   :  { %2662 = vst [vmem:[#allocation34_spill] sm:$0xff] %v1827_v38  ;;  %v1833_v40 = vld [vmem:[#allocation6 + $0xa0] sm:$0xff]  ;;  %v1835_v41 = vld [vmem:[#allocation6 + $0xa8] sm:$0xff]  ;;  %285 = vmatpush.msra.mxu0 %v1821_v36  ;;  %325 = vmatpush.msra.mxu2 %v1823_v37 }
  0x31   :  { %2663 = vst [vmem:[#allocation35_spill] sm:$0xff] %v1829_v39  ;;  %v1839_v42 = vld [vmem:[#allocation6 + $0x2a0] sm:$0xff]  ;;  %v1841_v43 = vld [vmem:[#allocation6 + $0x2a8] sm:$0xff]  ;;  %305 = vmatpush.msra.mxu1 %v1827_v38  ;;  %345 = vmatpush.msra.mxu3 %v1829_v39 }
  0x32   :  { %2664 = vst [vmem:[#allocation36_spill] sm:$0xff] %v1839_v42  ;;  %v1845_v44 = vld [vmem:[#allocation6 + $0x80] sm:$0xff]  ;;  %v1847_v45 = vld [vmem:[#allocation6 + $0x88] sm:$0xff]  ;;  %286 = vmatpush.msra.mxu0 %v1833_v40  ;;  %326 = vmatpush.msra.mxu2 %v1835_v41 }
  0x33   :  { %2665 = vst [vmem:[#allocation37_spill] sm:$0xff] %v1841_v43  ;;  %v1851_v46 = vld [vmem:[#allocation6 + $0x280] sm:$0xff]  ;;  %v1853_v47 = vld [vmem:[#allocation6 + $0x288] sm:$0xff]  ;;  %306 = vmatpush.msra.mxu1 %v1839_v42  ;;  %346 = vmatpush.msra.mxu3 %v1841_v43 }
  0x34   :  { %2666 = vst [vmem:[#allocation38_spill] sm:$0xff] %v1851_v46  ;;  %v1857_v48 = vld [vmem:[#allocation6 + $0x60] sm:$0xff]  ;;  %v1859_v49 = vld [vmem:[#allocation6 + $0x68] sm:$0xff]  ;;  %287 = vmatpush.msra.mxu0 %v1845_v44  ;;  %327 = vmatpush.msra.mxu2 %v1847_v45 }
  0x35   :  { %2667 = vst [vmem:[#allocation39_spill] sm:$0xff] %v1853_v47  ;;  %v1863_v50 = vld [vmem:[#allocation6 + $0x260] sm:$0xff]  ;;  %v1865_v51 = vld [vmem:[#allocation6 + $0x268] sm:$0xff]  ;;  %307 = vmatpush.msra.mxu1 %v1851_v46  ;;  %347 = vmatpush.msra.mxu3 %v1853_v47 }
  0x36   :  { %2668 = vst [vmem:[#allocation40_spill] sm:$0xff] %v1863_v50  ;;  %v1869_v52 = vld [vmem:[#allocation6 + $0x40] sm:$0xff]  ;;  %v1871_v53 = vld [vmem:[#allocation6 + $0x48] sm:$0xff]  ;;  %288 = vmatpush.msra.mxu0 %v1857_v48  ;;  %328 = vmatpush.msra.mxu2 %v1859_v49 }
  0x37   :  { %2669 = vst [vmem:[#allocation41_spill] sm:$0xff] %v1865_v51  ;;  %v1875_v54 = vld [vmem:[#allocation6 + $0x240] sm:$0xff]  ;;  %v1877_v55 = vld [vmem:[#allocation6 + $0x248] sm:$0xff]  ;;  %308 = vmatpush.msra.mxu1 %v1863_v50  ;;  %348 = vmatpush.msra.mxu3 %v1865_v51 }
  0x38   :  { %2670 = vst [vmem:[#allocation42_spill] sm:$0xff] %v1869_v52  ;;  %v1881_v56 = vld [vmem:[#allocation6 + $0x20] sm:$0xff]  ;;  %v1883_v57 = vld [vmem:[#allocation6 + $0x28] sm:$0xff]  ;;  %289 = vmatpush.msra.mxu0 %v1869_v52  ;;  %329 = vmatpush.msra.mxu2 %v1871_v53  ;;  %v1940_v52 = vld [vmem:[#allocation6 + $0x3b8] sm:$0xff] }
  0x39   :  { %2671 = vst [vmem:[#allocation43_spill] sm:$0xff] %v1871_v53  ;;  %v1887_v58 = vld [vmem:[#allocation6 + $0x220] sm:$0xff]  ;;  %v1889_v59 = vld [vmem:[#allocation6 + $0x228] sm:$0xff]  ;;  %309 = vmatpush.msra.mxu1 %v1875_v54  ;;  %349 = vmatpush.msra.mxu3 %v1877_v55  ;;  %v1972_v53 = vld [vmem:[#allocation6 + $0x358] sm:$0xff] }
  0x3a   :  { %2672 = vst [vmem:[#allocation44_spill] sm:$0xff] %v1875_v54  ;;  %v1893_v60 = vld [vmem:[#allocation6] sm:$0xff]  ;;  %v1895_v61 = vld [vmem:[#allocation6 + $0x8] sm:$0xff]  ;;  %290 = vmatpush.msra.mxu0 %v1881_v56  ;;  %330 = vmatpush.msra.mxu2 %v1883_v57  ;;  %v1934_v54 = vld [vmem:[#allocation6 + $0x198] sm:$0xff] }
  0x3b   :  { %2673 = vst [vmem:[#allocation45_spill] sm:$0xff] %v1877_v55  ;;  %v1899_v62 = vld [vmem:[#allocation3] sm:$0xff]  ;;  %310 = vmatpush.msra.mxu1 %v1887_v58  ;;  %350 = vmatpush.msra.mxu3 %v1889_v59  ;;  %v1909_v55 = vld [vmem:[#allocation6 + $0x208] sm:$0xff] }
  0x3c   :  { %2674 = vst [vmem:[#allocation46_spill] sm:$0xff] %v1881_v56  ;;  %v1905_v51 = vld [vmem:[#allocation6 + $0x200] sm:$0xff]  ;;  %291 = vmatpush.msra.mxu0 %v1893_v60  ;;  %331 = vmatpush.msra.mxu2 %v1895_v61  ;;  %v1913_v56 = vld [vmem:[#allocation6 + $0x1d8] sm:$0xff] }
  0x3d   :  { %2675 = vst [vmem:[#allocation47_spill] sm:$0xff] %v1883_v57  ;;  %292 = vmatmul.f32.vlgmr.msra.gmra.mxu0 %v1899_v62  ;;  %332 = vmatmul.f32.vlgmr.msra.gmra.mxu2 %v1899_v62  ;;  %v1925_v57 = vld [vmem:[#allocation6 + $0x3f0] sm:$0xff] }
  0x3e   :  { %2676 = vst [vmem:[#allocation48_spill] sm:$0xff] %v1887_v58  ;;  %396 = vmatpush.msrb.mxu2 %v1903_v63  ;;  %311 = vmatpush.msra.mxu1 %v1905_v51  ;;  %v1919_v58 = vld [vmem:[#allocation6 + $0x1f0] sm:$0xff]  ;;  %v1929_v63 = vld [vmem:[#allocation6 + $0x3d8] sm:$0xff] }
  0x3f   :  { %2677 = vst [vmem:[#allocation49_spill] sm:$0xff] %v1889_v59  ;;  %v1917_v59 = vld [vmem:[#allocation6 + $0x3f8] sm:$0xff]  ;;  %351 = vmatpush.msra.mxu3 %v1909_v55  ;;  %356 = vmatpush.msrb.mxu0 %v1919_v58 }
  0x40   :  { %2678 = vst [vmem:[#allocation50_spill] sm:$0xff] %v1893_v60  ;;  %v2506_v60 = vmov 0.0   ;;  %397 = vmatpush.msrb.mxu2 %v1913_v56  ;;  %376 = vmatpush.msrb.mxu1 %v1925_v57 }
  0x41   :  { %2679 = vst [vmem:[#allocation51_spill] sm:$0xff] %v1895_v61  ;;  %312 = vmatmul.f32.vlgmr.msra.gmra.mxu1 %v2506_v60  ;;  %v1923_v61 = vld [vmem:[#allocation6 + $0x1b8] sm:$0xff]  ;;  %352 = vmatmul.f32.vlgmr.msra.gmra.mxu3 %v2506_v60  ;;  %v1943_v60 = vld [vmem:[#allocation6 + $0x1b0] sm:$0xff] }
  0x42   :  { %2681 = vst [vmem:[#allocation53_spill] sm:$0xff] %v1905_v51  ;;  %v1931_v51 = vld [vmem:[#allocation6 + $0x1d0] sm:$0xff]  ;;  %416 = vmatpush.msrb.mxu3 %v1917_v59  ;;  %398 = vmatpush.msrb.mxu2 %v1923_v61 }
  0x43   :  { %2682 = vst [vmem:[#allocation54_spill] sm:$0xff] %v1909_v55  ;;  %v1937_v55 = vld [vmem:[#allocation6 + $0x3d0] sm:$0xff]  ;;  %357 = vmatpush.msrb.mxu0 %v1931_v51 }
  0x44   :  { %2683 = vst [vmem:[#allocation55_spill] sm:$0xff] %v1913_v56  ;;  %417 = vmatpush.msrb.mxu3 %v1929_v63  ;;  %v1946_v56 = vld [vmem:[#allocation6 + $0x178] sm:$0xff]  ;;  %399 = vmatpush.msrb.mxu2 %v1934_v54 }
  0x45   :  { %2684 = vst [vmem:[#allocation56_spill] sm:$0xff] %v1917_v59  ;;  %v1949_v59 = vld [vmem:[#allocation6 + $0x3b0] sm:$0xff]  ;;  %377 = vmatpush.msrb.mxu1 %v1937_v55  ;;  %358 = vmatpush.msrb.mxu0 %v1943_v60 }
  0x46   :  { %2685 = vst [vmem:[#allocation57_spill] sm:$0xff] %v1919_v58  ;;  %v1952_v58 = vld [vmem:[#allocation6 + $0x398] sm:$0xff]  ;;  %418 = vmatpush.msrb.mxu3 %v1940_v52  ;;  %400 = vmatpush.msrb.mxu2 %v1946_v56 }
  0x47   :  { %2686 = vst [vmem:[#allocation58_spill] sm:$0xff] %v1923_v61  ;;  %v1955_v61 = vld [vmem:[#allocation6 + $0x190] sm:$0xff]  ;;  %378 = vmatpush.msrb.mxu1 %v1949_v59 }
  0x48   :  { %2687 = vst [vmem:[#allocation59_spill] sm:$0xff] %v1925_v57  ;;  %v1958_v57 = vld [vmem:[#allocation6 + $0x158] sm:$0xff]  ;;  %419 = vmatpush.msrb.mxu3 %v1952_v58  ;;  %359 = vmatpush.msrb.mxu0 %v1955_v61 }
  0x49   :  { %2688 = vst [vmem:[#allocation60_spill] sm:$0xff] %v1929_v63  ;;  %v1961_v63 = vld [vmem:[#allocation6 + $0x390] sm:$0xff]  ;;  %401 = vmatpush.msrb.mxu2 %v1958_v57 }
  0x4a   :  { %2689 = vst [vmem:[#allocation61_spill] sm:$0xff] %v1931_v51  ;;  %v1964_v51 = vld [vmem:[#allocation6 + $0x378] sm:$0xff]  ;;  %379 = vmatpush.msrb.mxu1 %v1961_v63 }
  0x4b   :  { %2690 = vst [vmem:[#allocation62_spill] sm:$0xff] %v1934_v54  ;;  %v1967_v54 = vld [vmem:[#allocation6 + $0x170] sm:$0xff]  ;;  %420 = vmatpush.msrb.mxu3 %v1964_v51 }
  0x4c   :  { %2691 = vst [vmem:[#allocation63_spill] sm:$0xff] %v1937_v55  ;;  %v1970_v55 = vld [vmem:[#allocation6 + $0x138] sm:$0xff]  ;;  %360 = vmatpush.msrb.mxu0 %v1967_v54 }
  0x4d   :  { %2692 = vst [vmem:[#allocation64_spill] sm:$0xff] %v1940_v52  ;;  %v1975_v52 = vld [vmem:[#allocation6 + $0x370] sm:$0xff]  ;;  %402 = vmatpush.msrb.mxu2 %v1970_v55  ;;  %421 = vmatpush.msrb.mxu3 %v1972_v53 }
  0x4e   :  { %2693 = vst [vmem:[#allocation65_spill] sm:$0xff] %v1943_v60  ;;  %v1988_v60 = vld [vmem:[#allocation6 + $0x338] sm:$0xff]  ;;  %380 = vmatpush.msrb.mxu1 %v1975_v52 }
  0x4f   :  { %2694 = vst [vmem:[#allocation66_spill] sm:$0xff] %v1946_v56  ;;  %v1979_v56 = vld [vmem:[#allocation6 + $0x150] sm:$0xff]  ;;  %422 = vmatpush.msrb.mxu3 %v1988_v60 }
  0x50   :  { %2695 = vst [vmem:[#allocation67_spill] sm:$0xff] %v1949_v59  ;;  %v1982_v59 = vld [vmem:[#allocation6 + $0x118] sm:$0xff]  ;;  %361 = vmatpush.msrb.mxu0 %v1979_v56 }
  0x51   :  { %2696 = vst [vmem:[#allocation68_spill] sm:$0xff] %v1952_v58  ;;  %v1985_v58 = vld [vmem:[#allocation6 + $0x350] sm:$0xff]  ;;  %403 = vmatpush.msrb.mxu2 %v1982_v59 }
  0x52   :  { %2697 = vst [vmem:[#allocation69_spill] sm:$0xff] %v1955_v61  ;;  %v1991_v61 = vld [vmem:[#allocation6 + $0x130] sm:$0xff]  ;;  %381 = vmatpush.msrb.mxu1 %v1985_v58 }
  0x53   :  { %2698 = vst [vmem:[#allocation70_spill] sm:$0xff] %v1958_v57  ;;  %v1994_v57 = vld [vmem:[#allocation6 + $0xf8] sm:$0xff]  ;;  %362 = vmatpush.msrb.mxu0 %v1991_v61 }
  0x54   :  { %2699 = vst [vmem:[#allocation71_spill] sm:$0xff] %v1961_v63  ;;  %v2000_v63 = vld [vmem:[#allocation6 + $0x318] sm:$0xff]  ;;  %404 = vmatpush.msrb.mxu2 %v1994_v57 }
  0x55   :  { %2700 = vst [vmem:[#allocation72_spill] sm:$0xff] %v1964_v51  ;;  %v1997_v51 = vld [vmem:[#allocation6 + $0x330] sm:$0xff]  ;;  %423 = vmatpush.msrb.mxu3 %v2000_v63 }
  0x56   :  { %2701 = vst [vmem:[#allocation73_spill] sm:$0xff] %v1967_v54  ;;  %382 = vmatpush.msrb.mxu1 %v1997_v51 }
  0x57   :  { %2702 = vst [vmem:[#allocation74_spill] sm:$0xff] %v1970_v55  ;;  %v2003_v55 = vld [vmem:[#allocation6 + $0x110] sm:$0xff] }
  0x58   :  { %2703 = vst [vmem:[#allocation75_spill] sm:$0xff] %v1972_v53  ;;  %v2009_v53 = vld [vmem:[#allocation6 + $0x310] sm:$0xff]  ;;  %363 = vmatpush.msrb.mxu0 %v2003_v55 }
  0x59   :  { %2704 = vst [vmem:[#allocation76_spill] sm:$0xff] %v1975_v52  ;;  %v2006_v52 = vld [vmem:[#allocation6 + $0xd8] sm:$0xff]  ;;  %383 = vmatpush.msrb.mxu1 %v2009_v53 }
  0x5a   :  { %2705 = vst [vmem:[#allocation77_spill] sm:$0xff] %v1979_v56  ;;  %v2012_v56 = vld [vmem:[#allocation6 + $0x2f8] sm:$0xff]  ;;  %405 = vmatpush.msrb.mxu2 %v2006_v52 }
  0x5b   :  { %2706 = vst [vmem:[#allocation78_spill] sm:$0xff] %v1982_v59  ;;  %v2015_v59 = vld [vmem:[#allocation6 + $0xf0] sm:$0xff]  ;;  %424 = vmatpush.msrb.mxu3 %v2012_v56 }
  0x5c   :  { %2707 = vst [vmem:[#allocation79_spill] sm:$0xff] %v1985_v58  ;;  %v2018_v58 = vld [vmem:[#allocation6 + $0xb8] sm:$0xff]  ;;  %364 = vmatpush.msrb.mxu0 %v2015_v59 }
  0x5d   :  { %2708 = vst [vmem:[#allocation80_spill] sm:$0xff] %v1988_v60  ;;  %v2021_v60 = vld [vmem:[#allocation6 + $0x2f0] sm:$0xff]  ;;  %406 = vmatpush.msrb.mxu2 %v2018_v58 }
  0x5e   :  { %2709 = vst [vmem:[#allocation81_spill] sm:$0xff] %v1991_v61  ;;  %v2024_v61 = vld [vmem:[#allocation6 + $0x2d8] sm:$0xff]  ;;  %384 = vmatpush.msrb.mxu1 %v2021_v60 }
  0x5f   :  { %2710 = vst [vmem:[#allocation82_spill] sm:$0xff] %v1994_v57  ;;  %v2027_v57 = vld [vmem:[#allocation6 + $0xd0] sm:$0xff]  ;;  %425 = vmatpush.msrb.mxu3 %v2024_v61 }
  0x60   :  { %2711 = vst [vmem:[#allocation83_spill] sm:$0xff] %v1997_v51  ;;  %v2030_v51 = vld [vmem:[#allocation6 + $0x98] sm:$0xff]  ;;  %365 = vmatpush.msrb.mxu0 %v2027_v57 }
  0x61   :  { %2712 = vst [vmem:[#allocation84_spill] sm:$0xff] %v2000_v63  ;;  %v2033_v63 = vld [vmem:[#allocation6 + $0x2d0] sm:$0xff]  ;;  %407 = vmatpush.msrb.mxu2 %v2030_v51 }
  0x62   :  { %2713 = vst [vmem:[#allocation85_spill] sm:$0xff] %v2003_v55  ;;  %v2036_v55 = vld [vmem:[#allocation6 + $0x2b8] sm:$0xff]  ;;  %385 = vmatpush.msrb.mxu1 %v2033_v63 }
  0x63   :  { %2714 = vst [vmem:[#allocation86_spill] sm:$0xff] %v2006_v52  ;;  %v2039_v52 = vld [vmem:[#allocation6 + $0xb0] sm:$0xff]  ;;  %426 = vmatpush.msrb.mxu3 %v2036_v55 }
  0x64   :  { %2715 = vst [vmem:[#allocation87_spill] sm:$0xff] %v2009_v53  ;;  %v2042_v53 = vld [vmem:[#allocation6 + $0x78] sm:$0xff]  ;;  %366 = vmatpush.msrb.mxu0 %v2039_v52 }
  0x65   :  { %2716 = vst [vmem:[#allocation88_spill] sm:$0xff] %v2012_v56  ;;  %v2045_v56 = vld [vmem:[#allocation6 + $0x2b0] sm:$0xff]  ;;  %408 = vmatpush.msrb.mxu2 %v2042_v53 }
  0x66   :  { %2717 = vst [vmem:[#allocation89_spill] sm:$0xff] %v2015_v59  ;;  %v2048_v59 = vld [vmem:[#allocation6 + $0x298] sm:$0xff]  ;;  %386 = vmatpush.msrb.mxu1 %v2045_v56 }
  0x67   :  { %2718 = vst [vmem:[#allocation90_spill] sm:$0xff] %v2018_v58  ;;  %v2051_v58 = vld [vmem:[#allocation6 + $0x90] sm:$0xff]  ;;  %427 = vmatpush.msrb.mxu3 %v2048_v59 }
  0x68   :  { %2719 = vst [vmem:[#allocation91_spill] sm:$0xff] %v2021_v60  ;;  %v2054_v60 = vld [vmem:[#allocation6 + $0x58] sm:$0xff]  ;;  %367 = vmatpush.msrb.mxu0 %v2051_v58 }
  0x69   :  { %2720 = vst [vmem:[#allocation92_spill] sm:$0xff] %v2024_v61  ;;  %v2057_v61 = vld [vmem:[#allocation6 + $0x290] sm:$0xff]  ;;  %409 = vmatpush.msrb.mxu2 %v2054_v60 }
  0x6a   :  { %2721 = vst [vmem:[#allocation93_spill] sm:$0xff] %v2027_v57  ;;  %v2060_v57 = vld [vmem:[#allocation6 + $0x278] sm:$0xff]  ;;  %387 = vmatpush.msrb.mxu1 %v2057_v61 }
  0x6b   :  { %2722 = vst [vmem:[#allocation94_spill] sm:$0xff] %v2030_v51  ;;  %v2063_v51 = vld [vmem:[#allocation6 + $0x70] sm:$0xff]  ;;  %428 = vmatpush.msrb.mxu3 %v2060_v57 }
  0x6c   :  { %2723 = vst [vmem:[#allocation95_spill] sm:$0xff] %v2033_v63  ;;  %v2066_v63 = vld [vmem:[#allocation6 + $0x38] sm:$0xff]  ;;  %368 = vmatpush.msrb.mxu0 %v2063_v51 }
  0x6d   :  { %2724 = vst [vmem:[#allocation96_spill] sm:$0xff] %v2036_v55  ;;  %v2069_v55 = vld [vmem:[#allocation6 + $0x270] sm:$0xff]  ;;  %410 = vmatpush.msrb.mxu2 %v2066_v63 }
  0x6e   :  { %2725 = vst [vmem:[#allocation97_spill] sm:$0xff] %v2039_v52  ;;  %v2072_v52 = vld [vmem:[#allocation6 + $0x258] sm:$0xff]  ;;  %388 = vmatpush.msrb.mxu1 %v2069_v55 }
  0x6f   :  { %2726 = vst [vmem:[#allocation98_spill] sm:$0xff] %v2042_v53  ;;  %v2075_v53 = vld [vmem:[#allocation6 + $0x50] sm:$0xff]  ;;  %429 = vmatpush.msrb.mxu3 %v2072_v52 }
  0x70   :  { %2727 = vst [vmem:[#allocation99_spill] sm:$0xff] %v2045_v56  ;;  %v2078_v56 = vld [vmem:[#allocation6 + $0x18] sm:$0xff]  ;;  %369 = vmatpush.msrb.mxu0 %v2075_v53 }
  0x71   :  { %2728 = vst [vmem:[#allocation100_spill] sm:$0xff] %v2048_v59  ;;  %v2081_v59 = vld [vmem:[#allocation6 + $0x250] sm:$0xff]  ;;  %411 = vmatpush.msrb.mxu2 %v2078_v56 }
  0x72   :  { %2729 = vst [vmem:[#allocation101_spill] sm:$0xff] %v2051_v58  ;;  %v2084_v58 = vld [vmem:[#allocation6 + $0x238] sm:$0xff]  ;;  %389 = vmatpush.msrb.mxu1 %v2081_v59  ;;  %412 = vmatmul.f32.vlgmr.msrb.gmra.mxu2 %v1899_v62 }
  0x73   :  { %2730 = vst [vmem:[#allocation102_spill] sm:$0xff] %v2054_v60  ;;  %v2089_v60 = vld [vmem:[#allocation6 + $0x30] sm:$0xff]  ;;  %430 = vmatpush.msrb.mxu3 %v2084_v58  ;;  %523 = vmatpush.msra.mxu2 %v1719_v1 }
  0x74   :  { %2731 = vst [vmem:[#allocation103_spill] sm:$0xff] %v2057_v61  ;;  %v2091_v61 = vld [vmem:[#allocation6 + $0x230] sm:$0xff]  ;;  %370 = vmatpush.msrb.mxu0 %v2089_v60 }
  0x75   :  { %2732 = vst [vmem:[#allocation104_spill] sm:$0xff] %v2060_v57  ;;  %v2094_v57 = vld [vmem:[#allocation6 + $0x218] sm:$0xff]  ;;  %390 = vmatpush.msrb.mxu1 %v2091_v61  ;;  %524 = vmatpush.msra.mxu2 %v1727_v4 }
  0x76   :  { %2733 = vst [vmem:[#allocation105_spill] sm:$0xff] %v2063_v51  ;;  %431 = vmatpush.msrb.mxu3 %v2094_v57 }
  0x77   :  { %2734 = vst [vmem:[#allocation106_spill] sm:$0xff] %v2066_v63  ;;  %v2099_v63 = vld [vmem:[#allocation6 + $0x10] sm:$0xff]  ;;  %525 = vmatpush.msra.mxu2 %v1737_v8 }
  0x78   :  { %2735 = vst [vmem:[#allocation107_spill] sm:$0xff] %v2069_v55  ;;  %371 = vmatpush.msrb.mxu0 %v2099_v63  ;;  %543 = vmatpush.msra.mxu3 %v1729_v5 }
  0x79   :  { %2736 = vst [vmem:[#allocation108_spill] sm:$0xff] %v2072_v52  ;;  %v2103_v52 = vld [vmem:[#allocation6 + $0x210] sm:$0xff]  ;;  %372 = vmatmul.f32.vlgmr.msrb.gmra.mxu0 %v1899_v62  ;;  %526 = vmatpush.msra.mxu2 %v1749_v12  ;;  %v2748_v62 = vld [vmem:[#allocation42_spill] sm:$0xff] }
  0x7a   :  { %2737 = vst [vmem:[#allocation109_spill] sm:$0xff] %v2075_v53  ;;  %391 = vmatpush.msrb.mxu1 %v2103_v52  ;;  %483 = vmatpush.msra.mxu0 %v1717_v0 }
  0x7b   :  { %2738 = vst [vmem:[#allocation110_spill] sm:$0xff] %v2078_v56  ;;  %v2746_v56 = vmov 0.0   ;;  %544 = vmatpush.msra.mxu3 %v1741_v9  ;;  %527 = vmatpush.msra.mxu2 %v1763_v17 }
  0x7c   :  { %2739 = vst [vmem:[#allocation111_spill] sm:$0xff] %v2081_v59  ;;  %432 = vmatmul.f32.vlgmr.msrb.gmra.mxu3 %v2746_v56  ;;  %392 = vmatmul.f32.vlgmr.msrb.gmra.mxu1 %v2746_v56  ;;  %v2747_v56 = vld [vmem:[#allocation43_spill] sm:$0xff] }
  0x7d   :  { %2740 = vst [vmem:[#allocation112_spill] sm:$0xff] %v2084_v58  ;;  %503 = vmatpush.msra.mxu1 %v1725_v3  ;;  %484 = vmatpush.msra.mxu0 %v1721_v2 }
  0x7e   :  { %2741 = vst [vmem:[#allocation113_spill] sm:$0xff] %v2089_v60  ;;  %545 = vmatpush.msra.mxu3 %v1751_v13  ;;  %528 = vmatpush.msra.mxu2 %v1775_v21  ;;  %v2778_v13 = vld [vmem:[#allocation76_spill] sm:$0xff] }
  0x7f   :  { %2742 = vst [vmem:[#allocation114_spill] sm:$0xff] %v2091_v61  ;;  %504 = vmatpush.msra.mxu1 %v1735_v7  ;;  %485 = vmatpush.msra.mxu0 %v1733_v6 }
  0x80   :  { %2743 = vst [vmem:[#allocation115_spill] sm:$0xff] %v2094_v57  ;;  %546 = vmatpush.msra.mxu3 %v1757_v15  ;;  %529 = vmatpush.msra.mxu2 %v1787_v25  ;;  %v2773_v15 = vld [vmem:[#allocation64_spill] sm:$0xff] }
  0x81   :  { %2744 = vst [vmem:[#allocation116_spill] sm:$0xff] %v2099_v63  ;;  %505 = vmatpush.msra.mxu1 %v1743_v10  ;;  %486 = vmatpush.msra.mxu0 %v1747_v11  ;;  %v2780_v10 = vld [vmem:[#allocation72_spill] sm:$0xff] }
  0x82   :  { %2745 = vst [vmem:[#allocation117_spill] sm:$0xff] %v2103_v52  ;;  %547 = vmatpush.msra.mxu3 %v1769_v19  ;;  %530 = vmatpush.msra.mxu2 %v1799_v29  ;;  %v2769_v19 = vld [vmem:[#allocation60_spill] sm:$0xff] }
  0x83   :  { %506 = vmatpush.msra.mxu1 %v1755_v14  ;;  %487 = vmatpush.msra.mxu0 %v1761_v16  ;;  %v2776_v14 = vld [vmem:[#allocation68_spill] sm:$0xff] }
  0x84   :  { %548 = vmatpush.msra.mxu3 %v1781_v23  ;;  %531 = vmatpush.msra.mxu2 %v1811_v33  ;;  %v2766_v23 = vld [vmem:[#allocation65_spill] sm:$0xff] }
  0x85   :  { %507 = vmatpush.msra.mxu1 %v1767_v18  ;;  %488 = vmatpush.msra.mxu0 %v1773_v20  ;;  %v2770_v18 = vld [vmem:[#allocation69_spill] sm:$0xff] }
  0x86   :  { %549 = vmatpush.msra.mxu3 %v1793_v27  ;;  %532 = vmatpush.msra.mxu2 %v1823_v37  ;;  %v2762_v27 = vld [vmem:[#allocation61_spill] sm:$0xff] }
  0x87   :  { %508 = vmatpush.msra.mxu1 %v1779_v22  ;;  %489 = vmatpush.msra.mxu0 %v1785_v24  ;;  %v2767_v22 = vld [vmem:[#allocation63_spill] sm:$0xff] }
  0x88   :  { %550 = vmatpush.msra.mxu3 %v1805_v31  ;;  %533 = vmatpush.msra.mxu2 %v1835_v41  ;;  %v2758_v31 = vld [vmem:[#allocation57_spill] sm:$0xff] }
  0x89   :  { %509 = vmatpush.msra.mxu1 %v1791_v26  ;;  %490 = vmatpush.msra.mxu0 %v1797_v28  ;;  %v2763_v26 = vld [vmem:[#allocation59_spill] sm:$0xff] }
  0x8a   :  { %551 = vmatpush.msra.mxu3 %v1817_v35  ;;  %534 = vmatpush.msra.mxu2 %v1847_v45  ;;  %v2754_v35 = vld [vmem:[#allocation48_spill] sm:$0xff] }
  0x8b   :  { %510 = vmatpush.msra.mxu1 %v1803_v30  ;;  %491 = vmatpush.msra.mxu0 %v1809_v32  ;;  %v2759_v30 = vld [vmem:[#allocation52_spill] sm:$0xff] }
  0x8c   :  { %552 = vmatpush.msra.mxu3 %v1829_v39  ;;  %535 = vmatpush.msra.mxu2 %v1859_v49  ;;  %v2750_v39 = vld [vmem:[#allocation44_spill] sm:$0xff] }
  0x8d   :  { %511 = vmatpush.msra.mxu1 %v1815_v34  ;;  %492 = vmatpush.msra.mxu0 %v1821_v36  ;;  %v2755_v34 = vld [vmem:[#allocation51_spill] sm:$0xff] }
  0x8e   :  { %553 = vmatpush.msra.mxu3 %v1841_v43  ;;  %536 = vmatpush.msra.mxu2 %v2747_v56  ;;  %v2752_v43 = vld [vmem:[#allocation46_spill] sm:$0xff] }
  0x8f   :  { %512 = vmatpush.msra.mxu1 %v1827_v38  ;;  %493 = vmatpush.msra.mxu0 %v1833_v40  ;;  %v2751_v38 = vld [vmem:[#allocation47_spill] sm:$0xff] }
  0x90   :  { %554 = vmatpush.msra.mxu3 %v1853_v47  ;;  %537 = vmatpush.msra.mxu2 %v2751_v38  ;;  %v2756_v47 = vld [vmem:[#allocation50_spill] sm:$0xff] }
  0x91   :  { %513 = vmatpush.msra.mxu1 %v1839_v42  ;;  %494 = vmatpush.msra.mxu0 %v1845_v44  ;;  %v2749_v42 = vld [vmem:[#allocation41_spill] sm:$0xff] }
  0x92   :  { %555 = vmatpush.msra.mxu3 %v2749_v42  ;;  %538 = vmatpush.msra.mxu2 %v2755_v34  ;;  %v2760_v42 = vld [vmem:[#allocation53_spill] sm:$0xff] }
  0x93   :  { %514 = vmatpush.msra.mxu1 %v1851_v46  ;;  %495 = vmatpush.msra.mxu0 %v1857_v48  ;;  %v2753_v46 = vld [vmem:[#allocation45_spill] sm:$0xff] }
  0x94   :  { %556 = vmatpush.msra.mxu3 %v2753_v46  ;;  %603 = vmatpush.msrb.mxu2 %v2759_v30  ;;  %v2764_v46 = vld [vmem:[#allocation55_spill] sm:$0xff] }
  0x95   :  { %515 = vmatpush.msra.mxu1 %v1863_v50  ;;  %496 = vmatpush.msra.mxu0 %v2748_v62  ;;  %v2757_v50 = vld [vmem:[#allocation49_spill] sm:$0xff] }
  0x96   :  { %557 = vmatpush.msra.mxu3 %v2757_v50  ;;  %604 = vmatpush.msrb.mxu2 %v2764_v46  ;;  %v2768_v50 = vld [vmem:[#allocation58_spill] sm:$0xff] }
  0x97   :  { %516 = vmatpush.msra.mxu1 %v2750_v39  ;;  %497 = vmatpush.msra.mxu0 %v2752_v43  ;;  %v2761_v39 = vld [vmem:[#allocation54_spill] sm:$0xff] }
  0x98   :  { %558 = vmatpush.msra.mxu3 %v2761_v39  ;;  %605 = vmatpush.msrb.mxu2 %v2768_v50  ;;  %v2772_v39 = vld [vmem:[#allocation62_spill] sm:$0xff] }
  0x99   :  { %517 = vmatpush.msra.mxu1 %v2754_v35  ;;  %498 = vmatpush.msra.mxu0 %v2756_v47  ;;  %v2765_v35 = vld [vmem:[#allocation56_spill] sm:$0xff] }
  0x9a   :  { %623 = vmatpush.msrb.mxu3 %v2765_v35  ;;  %606 = vmatpush.msrb.mxu2 %v2772_v39  ;;  %v2775_v35 = vld [vmem:[#allocation66_spill] sm:$0xff]  ;;  %v2782_v39 = vld [vmem:[#allocation79_spill] sm:$0xff] }
  0x9b   :  { %563 = vmatpush.msrb.mxu0 %v2758_v31  ;;  %518 = vmatpush.msra.mxu1 %v2760_v42  ;;  %v2771_v42 = vld [vmem:[#allocation67_spill] sm:$0xff] }
  0x9c   :  { %624 = vmatpush.msrb.mxu3 %v2769_v19  ;;  %607 = vmatpush.msrb.mxu2 %v2775_v35  ;;  %v2779_v19 = vld [vmem:[#allocation70_spill] sm:$0xff]  ;;  %v2786_v35 = vld [vmem:[#allocation83_spill] sm:$0xff] }
  0x9d   :  { %564 = vmatpush.msrb.mxu0 %v2762_v27  ;;  %583 = vmatpush.msrb.mxu1 %v2763_v26  ;;  %v2774_v26 = vld [vmem:[#allocation71_spill] sm:$0xff] }
  0x9e   :  { %625 = vmatpush.msrb.mxu3 %v2773_v15  ;;  %608 = vmatpush.msrb.mxu2 %v2779_v19  ;;  %v2783_v15 = vld [vmem:[#allocation74_spill] sm:$0xff]  ;;  %v2790_v19 = vld [vmem:[#allocation87_spill] sm:$0xff] }
  0x9f   :  { %565 = vmatpush.msrb.mxu0 %v2766_v23  ;;  %584 = vmatpush.msrb.mxu1 %v2767_v22  ;;  %v2777_v22 = vld [vmem:[#allocation77_spill] sm:$0xff] }
  0xa0   :  { %626 = vmatpush.msrb.mxu3 %v2776_v14  ;;  %609 = vmatpush.msrb.mxu2 %v2783_v15  ;;  %v2787_v14 = vld [vmem:[#allocation78_spill] sm:$0xff]  ;;  %v2794_v15 = vld [vmem:[#allocation91_spill] sm:$0xff] }
  0xa1   :  { %566 = vmatpush.msrb.mxu0 %v2770_v18  ;;  %585 = vmatpush.msrb.mxu1 %v2771_v42  ;;  %v2781_v42 = vld [vmem:[#allocation81_spill] sm:$0xff] }
  0xa2   :  { %627 = vmatpush.msrb.mxu3 %v2780_v10  ;;  %610 = vmatpush.msrb.mxu2 %v2787_v14  ;;  %v2791_v10 = vld [vmem:[#allocation82_spill] sm:$0xff]  ;;  %v2798_v14 = vld [vmem:[#allocation95_spill] sm:$0xff] }
  0xa3   :  { %567 = vmatpush.msrb.mxu0 %v1967_v54  ;;  %586 = vmatpush.msrb.mxu1 %v2774_v26  ;;  %v2784_v54 = vld [vmem:[#allocation75_spill] sm:$0xff]  ;;  %v2785_v26 = vld [vmem:[#allocation85_spill] sm:$0xff] }
  0xa4   :  { %628 = vmatpush.msrb.mxu3 %v2784_v54  ;;  %611 = vmatpush.msrb.mxu2 %v2791_v10  ;;  %v2795_v54 = vld [vmem:[#allocation86_spill] sm:$0xff]  ;;  %v2802_v10 = vld [vmem:[#allocation99_spill] sm:$0xff] }
  0xa5   :  { %568 = vmatpush.msrb.mxu0 %v2777_v22  ;;  %587 = vmatpush.msrb.mxu1 %v2778_v13  ;;  %v2788_v22 = vld [vmem:[#allocation80_spill] sm:$0xff]  ;;  %v2789_v13 = vld [vmem:[#allocation89_spill] sm:$0xff] }
  0xa6   :  { %629 = vmatpush.msrb.mxu3 %v2788_v22  ;;  %612 = vmatpush.msrb.mxu2 %v2795_v54  ;;  %v2799_v22 = vld [vmem:[#allocation90_spill] sm:$0xff] }
  0xa7   :  { %569 = vmatpush.msrb.mxu0 %v2781_v42  ;;  %588 = vmatpush.msrb.mxu1 %v2782_v39  ;;  %v2792_v42 = vld [vmem:[#allocation84_spill] sm:$0xff]  ;;  %v2793_v39 = vld [vmem:[#allocation93_spill] sm:$0xff] }
  0xa8   :  { %630 = vmatpush.msrb.mxu3 %v2792_v42  ;;  %613 = vmatpush.msrb.mxu2 %v2799_v22  ;;  %v2803_v42 = vld [vmem:[#allocation94_spill] sm:$0xff] }
  0xa9   :  { %570 = vmatpush.msrb.mxu0 %v2785_v26  ;;  %589 = vmatpush.msrb.mxu1 %v2786_v35  ;;  %v2796_v26 = vld [vmem:[#allocation88_spill] sm:$0xff]  ;;  %v2797_v35 = vld [vmem:[#allocation97_spill] sm:$0xff] }
  0xaa   :  { %631 = vmatpush.msrb.mxu3 %v2796_v26  ;;  %614 = vmatpush.msrb.mxu2 %v2803_v42  ;;  %v2806_v26 = vld [vmem:[#allocation98_spill] sm:$0xff] }
  0xab   :  { %571 = vmatpush.msrb.mxu0 %v2789_v13  ;;  %590 = vmatpush.msrb.mxu1 %v2790_v19  ;;  %v2800_v13 = vld [vmem:[#allocation92_spill] sm:$0xff]  ;;  %v2801_v19 = vld [vmem:[#allocation101_spill] sm:$0xff] }
  0xac   :  { %632 = vmatpush.msrb.mxu3 %v2800_v13  ;;  %615 = vmatpush.msrb.mxu2 %v2806_v26  ;;  %v2808_v13 = vld [vmem:[#allocation102_spill] sm:$0xff] }
  0xad   :  { %572 = vmatpush.msrb.mxu0 %v2793_v39  ;;  %591 = vmatpush.msrb.mxu1 %v2794_v15  ;;  %v2804_v39 = vld [vmem:[#allocation96_spill] sm:$0xff]  ;;  %v2805_v15 = vld [vmem:[#allocation103_spill] sm:$0xff] }
  0xae   :  { %633 = vmatpush.msrb.mxu3 %v2804_v39  ;;  %616 = vmatpush.msrb.mxu2 %v2808_v13  ;;  %v2810_v39 = vld [vmem:[#allocation106_spill] sm:$0xff] }
  0xaf   :  { %573 = vmatpush.msrb.mxu0 %v2797_v35  ;;  %592 = vmatpush.msrb.mxu1 %v2798_v14  ;;  %v2807_v35 = vld [vmem:[#allocation100_spill] sm:$0xff] }
  0xb0   :  { %634 = vmatpush.msrb.mxu3 %v2807_v35  ;;  %v2809_v14 = vld [vmem:[#allocation104_spill] sm:$0xff]  ;;  %617 = vmatpush.msrb.mxu2 %v2810_v39  ;;  %v2812_v35 = vld [vmem:[#allocation110_spill] sm:$0xff] }
  0xb1   :  { %574 = vmatpush.msrb.mxu0 %v2801_v19  ;;  %593 = vmatpush.msrb.mxu1 %v2802_v10  ;;  %v2811_v10 = vld [vmem:[#allocation108_spill] sm:$0xff] }
  0xb2   :  { %635 = vmatpush.msrb.mxu3 %v2809_v14  ;;  %618 = vmatpush.msrb.mxu2 %v2812_v35  ;;  %v264_v14 = vld [vmem:[#allocation8] sm:$0xf] }
  0xb3   :  { %575 = vmatpush.msrb.mxu0 %v2063_v51  ;;  %594 = vmatpush.msrb.mxu1 %v2805_v15 }
  0xb4   :  { %636 = vmatpush.msrb.mxu3 %v2811_v10 }
  0xb5   :  { %576 = vmatpush.msrb.mxu0 %v2075_v53  ;;  %595 = vmatpush.msrb.mxu1 %v2069_v55  ;;  %v2239_v55 = vperm.slane %v264_v14, 0 }
  0xb6   :  { %637 = vmatpush.msrb.mxu3 %v2084_v58 }
  0xb7   :  { %577 = vmatpush.msrb.mxu0 %v2089_v60  ;;  %596 = vmatpush.msrb.mxu1 %v2081_v59  ;;  %v2242_v60 = vperm.slane %v264_v14, 1 }
  0xb8   :  { %638 = vmatpush.msrb.mxu3 %v2094_v57 }
  0xb9   :  { %578 = vmatpush.msrb.mxu0 %v2099_v63  ;;  %597 = vmatpush.msrb.mxu1 %v2091_v61 }
  0xba   :  { %v293_v59 = vpop.f32.mrf.mxu0 }
  0xbb   :  { %598 = vmatpush.msrb.mxu1 %v2103_v52  ;;  %v294_v15 = vadd.f32 %v293_v59, %v2239_v55 }
  0xbe   :  { %v313_v39 = vpop.f32.mrf.mxu1 }
  0xbf   :  { %v314_v10 = vadd.f32 %v313_v39, %v294_v15  ;;  %v482_v15 = vld [vmem:[#allocation3 + $0x8] sm:$0xff] }
  0xc0   :  { %v333_v61 = vpop.f32.mrf.mxu2  ;;  %499 = vmatmul.f32.vlgmr.msra.gmra.mxu0 %v482_v15  ;;  %539 = vmatmul.f32.vlgmr.msra.gmra.mxu2 %v482_v15 }
  0xc1   :  { %v1257_v63 = vmul.f32 -1.442695, %v314_v10  ;;  %v334_v35 = vadd.f32 %v333_v61, %v2242_v60  ;;  %690 = vmatpush.msra.mxu0 %v1717_v0  ;;  %730 = vmatpush.msra.mxu2 %v1719_v1  ;;  %v2262_v1 = vperm.slane %v264_v14, 2 }
  0xc3   :  { %1282 = vpow2.f32 %v1257_v63  ;;  %691 = vmatpush.msra.mxu0 %v1721_v2  ;;  %731 = vmatpush.msra.mxu2 %v1727_v4  ;;  %v2264_v4 = vperm.slane %v264_v14, 3 }
  0xc4   :  { %v353_v58 = vpop.f32.mrf.mxu3 }
  0xc5   :  { %v354_v13 = vadd.f32 %v353_v58, %v334_v35  ;;  %692 = vmatpush.msra.mxu0 %v1733_v6  ;;  %732 = vmatpush.msra.mxu2 %v1737_v8 }
  0xc7   :  { %v1258_v52 = vmul.f32 -1.442695, %v354_v13  ;;  %693 = vmatpush.msra.mxu0 %v1747_v11  ;;  %733 = vmatpush.msra.mxu2 %v1749_v12 }
  0xc8   :  { %579 = vmatmul.f32.vlgmr.msrb.gmra.mxu0 %v482_v15  ;;  %619 = vmatmul.f32.vlgmr.msrb.gmra.mxu2 %v482_v15  ;;  %v2835_v15 = vld [vmem:[#allocation31_spill] sm:$0xff] }
  0xc9   :  { %v1283_v53 = vpop.eup %1282  ;;  %1284 = vpow2.f32 %v1258_v52  ;;  %694 = vmatpush.msra.mxu0 %v1761_v16  ;;  %734 = vmatpush.msra.mxu2 %v1763_v17 }
  0xca   :  { %v439_v57 = vadd.f32 1.0, %v1283_v53 }
  0xcb   :  { %695 = vmatpush.msra.mxu0 %v1773_v20  ;;  %735 = vmatpush.msra.mxu2 %v1775_v21  ;;  %v2851_v20 = vld [vmem:[#allocation41_spill] sm:$0xff] }
  0xcc   :  { %1286 = vrcp.f32 %v439_v57  ;;  %vm445_vm0 = vweird.f32 %v439_v57  ;;  %v451_v11 = vand.u32 2147483648, %v439_v57  ;;  %v449_v17 = vand.u32 2147483647, %v439_v57 }
  0xcd   :  { %696 = vmatpush.msra.mxu0 %v1785_v24  ;;  %736 = vmatpush.msra.mxu2 %v1787_v25 }
  0xce   :  { %v452_v52 = vor.u32 1.1754944e-38, %v451_v11  ;;  %vm450_vm5 = vcmp.eq.f32.partialorder %v449_v17, 8.507059e+37  ;;  %v2844_v11 = vld [vmem:[#allocation36_spill] sm:$0xff]  ;;  %v2847_v17 = vld [vmem:[#allocation39_spill] sm:$0xff] }
  0xcf   :  { %v1285_v26 = vpop.eup %1284  ;;  %697 = vmatpush.msra.mxu0 %v1797_v28  ;;  %737 = vmatpush.msra.mxu2 %v1799_v29 }
  0xd0   :  { %v2245_v51 = vadd.f32 1.0, %v1285_v26 }
  0xd1   :  { %698 = vmatpush.msra.mxu0 %v1809_v32  ;;  %738 = vmatpush.msra.mxu2 %v1811_v33 }
  0xd2   :  { %v1287_v59 = vpop.eup %1286  ;;  %1288 = vrcp.f32 %v2245_v51  ;;  %vm464_vm3 = vweird.f32 %v2245_v51  ;;  %v470_v53 = vand.u32 2147483648, %v2245_v51  ;;  %v468_v61 = vand.u32 2147483647, %v2245_v51 }
  0xd3   :  { %v441_v39 = vmul.f32 %v1287_v59, %v439_v57  ;;  %vm446_vm1 = vweird.f32 %v1287_v59  ;;  %699 = vmatpush.msra.mxu0 %v1821_v36  ;;  %739 = vmatpush.msra.mxu2 %v1823_v37 }
  0xd4   :  { %vm2273_vm2 = vmor %vm445_vm0, %vm446_vm1  ;;  %v471_v33 = vor.u32 1.1754944e-38, %v470_v53  ;;  %vm469_vm7 = vcmp.eq.f32.partialorder %v468_v61, 8.507059e+37  ;;  %v2859_v53 = vld [vmem:[#allocation49_spill] sm:$0xff]  ;;  %v2864_v61 = vld [vmem:[#allocation59_spill] sm:$0xff] }
  0xd5   :  { %v442_v10 = vsub.f32 1.0, %v441_v39  ;;  %700 = vmatpush.msra.mxu0 %v1833_v40  ;;  %740 = vmatpush.msra.mxu2 %v1835_v41  ;;  %v2836_v39 = vld [vmem:[#allocation89_spill] sm:$0xff] }
  0xd7   :  { %v443_v0 = vmul.f32 %v1287_v59, %v442_v10  ;;  %701 = vmatpush.msra.mxu0 %v1845_v44  ;;  %741 = vmatpush.msra.mxu2 %v1847_v45  ;;  %v2837_v10 = vld [vmem:[#allocation82_spill] sm:$0xff] }
  0xd8   :  { %v2252_v13 = vpop.eup %1288 }
  0xd9   :  { %v460_v26 = vmul.f32 %v2252_v13, %v2245_v51  ;;  %v444_v8 = vadd.f32 %v1287_v59, %v443_v0  ;;  %vm465_vm4 = vweird.f32 %v2252_v13  ;;  %702 = vmatpush.msra.mxu0 %v1857_v48  ;;  %742 = vmatpush.msra.mxu2 %v1859_v49  ;;  %v2829_v48 = vld [vmem:[#allocation74_spill] sm:$0xff]  ;;  %v2830_v49 = vld [vmem:[#allocation28_spill] sm:$0xff]  ;;  %v2832_v51 = vld [vmem:[#allocation85_spill] sm:$0xff] }
  0xda   :  { %vm466_vm6 = vmor %vm464_vm3, %vm465_vm4  ;;  %v2840_v0 = vld [vmem:[#allocation93_spill] sm:$0xff] }
  0xdb   :  { %v461_v2 = vsub.f32 1.0, %v460_v26  ;;  %v448_v24 = vsel %vm2273_vm2, %v1287_v59, %v444_v8  ;;  %703 = vmatpush.msra.mxu0 %v2748_v62  ;;  %743 = vmatpush.msra.mxu2 %v2747_v56  ;;  %v2833_v56 = vld [vmem:[#allocation78_spill] sm:$0xff]  ;;  %v2839_v26 = vld [vmem:[#allocation33_spill] sm:$0xff] }
  0xdc   :  { %v453_v58 = vsel %vm450_vm5, %v452_v52, %v448_v24  ;;  %v2834_v62 = vld [vmem:[#allocation30_spill] sm:$0xff]  ;;  %v2843_v8 = vld [vmem:[#allocation97_spill] sm:$0xff]  ;;  %v2854_v24 = vld [vmem:[#allocation44_spill] sm:$0xff] }
  0xdd   :  { %v462_v14 = vmul.f32 %v2252_v13, %v461_v2  ;;  %704 = vmatpush.msra.mxu0 %v2752_v43  ;;  %744 = vmatpush.msra.mxu2 %v2751_v38  ;;  %v2825_v38 = vld [vmem:[#allocation70_spill] sm:$0xff]  ;;  %v2858_v52 = vld [vmem:[#allocation48_spill] sm:$0xff] }
  0xde   :  { %v2826_v43 = vld [vmem:[#allocation26_spill] sm:$0xff] }
  0xdf   :  { %v463_v29 = vadd.f32 %v2252_v13, %v462_v14  ;;  %705 = vmatpush.msra.mxu0 %v2756_v47  ;;  %745 = vmatpush.msra.mxu2 %v2755_v34  ;;  %v2818_v34 = vld [vmem:[#allocation73_spill] sm:$0xff]  ;;  %v2841_v2 = vld [vmem:[#allocation34_spill] sm:$0xff] }
  0xe0   :  { %v2828_v47 = vld [vmem:[#allocation81_spill] sm:$0xff]  ;;  %v2849_v14 = vld [vmem:[#allocation98_spill] sm:$0xff] }
  0xe1   :  { %v467_v59 = vsel %vm466_vm6, %v2252_v13, %v463_v29  ;;  %770 = vmatpush.msrb.mxu0 %v2758_v31  ;;  %810 = vmatpush.msrb.mxu2 %v2759_v30  ;;  %v2816_v30 = vld [vmem:[#allocation20_spill] sm:$0xff]  ;;  %v2817_v31 = vld [vmem:[#allocation21_spill] sm:$0xff]  ;;  %v2863_v29 = vld [vmem:[#allocation54_spill] sm:$0xff] }
  0xe2   :  { %v472_v36 = vsel %vm469_vm7, %v471_v33, %v467_v59  ;;  %v2838_v13 = vld [vmem:[#allocation32_spill] sm:$0xff]  ;;  %v2866_v33 = vld [vmem:[#allocation63_spill] sm:$0xff] }
  0xe3   :  { %v477_v37 = vsub.f32 1.0, %v472_v36  ;;  %v479_v44 = vmul.f32 0.0, %v472_v36  ;;  %771 = vmatpush.msrb.mxu0 %v2762_v27  ;;  %811 = vmatpush.msrb.mxu2 %v2764_v46  ;;  %v2815_v27 = vld [vmem:[#allocation62_spill] sm:$0xff]  ;;  %v2827_v46 = vld [vmem:[#allocation27_spill] sm:$0xff]  ;;  %v2869_v36 = vld [vmem:[#allocation64_spill] sm:$0xff] }
  0xe4   :  { %v2868_v59 = vld [vmem:[#allocation67_spill] sm:$0xff] }
  0xe5   :  { %772 = vmatpush.msrb.mxu0 %v2766_v23  ;;  %812 = vmatpush.msrb.mxu2 %v2768_v50  ;;  %v2821_v23 = vld [vmem:[#allocation23_spill] sm:$0xff]  ;;  %v2831_v50 = vld [vmem:[#allocation29_spill] sm:$0xff] }
  0xe7   :  { %773 = vmatpush.msrb.mxu0 %v2770_v18  ;;  %813 = vmatpush.msrb.mxu2 %v2815_v27  ;;  %v2824_v18 = vld [vmem:[#allocation77_spill] sm:$0xff]  ;;  %v2874_v27 = vld [vmem:[#allocation79_spill] sm:$0xff] }
  0xe9   :  { %774 = vmatpush.msrb.mxu0 %v2818_v34  ;;  %v2877_v34 = vld [vmem:[#allocation80_spill] sm:$0xff] }
  0xeb   :  { %775 = vmatpush.msrb.mxu0 %v2824_v18  ;;  %v2883_v18 = vld [vmem:[#allocation92_spill] sm:$0xff] }
  0xed   :  { %776 = vmatpush.msrb.mxu0 %v2828_v47  ;;  %v2887_v47 = vld [vmem:[#allocation100_spill] sm:$0xff] }
  0xef   :  { %777 = vmatpush.msrb.mxu0 %v2832_v51  ;;  %v2891_v51 = vld [vmem:[#allocation108_spill] sm:$0xff] }
  0xf1   :  { %778 = vmatpush.msrb.mxu0 %v2836_v39  ;;  %v2895_v39 = vld [vmem:[#allocation115_spill] sm:$0xff] }
  0xf3   :  { %779 = vmatpush.msrb.mxu0 %v2840_v0 }
  0xf5   :  { %v413_v12 = vpop.f32.mrf.mxu2  ;;  %780 = vmatpush.msrb.mxu0 %v2843_v8 }
  0xf6   :  { %v373_v6 = vpop.f32.mrf.mxu0  ;;  %v414_v35 = vadd.f32 %v413_v12, %v2264_v4  ;;  %v2845_v12 = vld [vmem:[#allocation37_spill] sm:$0xff] }
  0xf7   :  { %v374_v16 = vadd.f32 %v373_v6, %v2262_v1  ;;  %v2842_v6 = vld [vmem:[#allocation35_spill] sm:$0xff]  ;;  %781 = vmatpush.msrb.mxu0 %v2801_v19  ;;  %v2855_v19 = vld [vmem:[#allocation45_spill] sm:$0xff] }
  0xf9   :  { %v393_v21 = vpop.f32.mrf.mxu1 }
  0xfa   :  { %v394_v28 = vadd.f32 %v393_v21, %v374_v16  ;;  %v2846_v16 = vld [vmem:[#allocation38_spill] sm:$0xff] }
  0xfb   :  { %v2853_v21 = vld [vmem:[#allocation102_spill] sm:$0xff] }
  0xff   :  { %v433_v25 = vpop.f32.mrf.mxu3 }
 0x100   :  { %v434_v57 = vadd.f32 %v433_v25, %v414_v35  ;;  %v2850_v35 = vld [vmem:[#allocation40_spill] sm:$0xff]  ;;  %v2857_v25 = vld [vmem:[#allocation106_spill] sm:$0xff] }
 0x102   :  { %v474_v32 = vmul.f32 %v453_v58, %v434_v57  ;;  %v2860_v57 = vld [vmem:[#allocation116_spill] sm:$0xff]  ;;  %v2862_v58 = vld [vmem:[#allocation53_spill] sm:$0xff] }
 0x104   :  { %v475_v63 = vadd.f32 %v474_v32, %v394_v28  ;;  %v2861_v28 = vld [vmem:[#allocation110_spill] sm:$0xff]  ;;  %v2865_v32 = vld [vmem:[#allocation56_spill] sm:$0xff] }
 0x106   :  { %1290 = vtanh.f32 %v475_v63  ;;  %v2867_v63 = vld [vmem:[#allocation60_spill] sm:$0xff] }
 0x10c   :  { %v1291_v40 = vpop.eup %1290 }
 0x10d   :  { %v478_v41 = vmul.f32 %v1291_v40, %v477_v37  ;;  %v2870_v37 = vld [vmem:[#allocation71_spill] sm:$0xff]  ;;  %v2871_v40 = vld [vmem:[#allocation68_spill] sm:$0xff] }
 0x10f   :  { %v2307_v45 = vadd.f32 %v479_v44, %v478_v41  ;;  %v2872_v41 = vld [vmem:[#allocation76_spill] sm:$0xff] }
 0x110   :  { %v2873_v44 = vld [vmem:[#allocation72_spill] sm:$0xff] }
 0x111   :  { %519 = vmatmul.f32.vlgmr.msra.gmra.mxu1 %v2307_v45  ;;  %559 = vmatmul.f32.vlgmr.msra.gmra.mxu3 %v2307_v45 }
 0x112   :  { %710 = vmatpush.msra.mxu1 %v1725_v3  ;;  %750 = vmatpush.msra.mxu3 %v1729_v5  ;;  %v2819_v3 = vld [vmem:[#allocation66_spill] sm:$0xff] }
 0x113   :  { %814 = vmatpush.msrb.mxu2 %v2819_v3  ;;  %v2820_v5 = vld [vmem:[#allocation22_spill] sm:$0xff]  ;;  %v2878_v3 = vld [vmem:[#allocation87_spill] sm:$0xff] }
 0x114   :  { %711 = vmatpush.msra.mxu1 %v1735_v7  ;;  %751 = vmatpush.msra.mxu3 %v1741_v9  ;;  %v2822_v7 = vld [vmem:[#allocation24_spill] sm:$0xff]  ;;  %v2823_v9 = vld [vmem:[#allocation25_spill] sm:$0xff] }
 0x115   :  { %815 = vmatpush.msrb.mxu2 %v2825_v38  ;;  %v2884_v38 = vld [vmem:[#allocation99_spill] sm:$0xff] }
 0x116   :  { %712 = vmatpush.msra.mxu1 %v2816_v30  ;;  %752 = vmatpush.msra.mxu3 %v2817_v31  ;;  %v2875_v30 = vld [vmem:[#allocation75_spill] sm:$0xff] }
 0x117   :  { %816 = vmatpush.msrb.mxu2 %v2829_v48  ;;  %v2876_v31 = vld [vmem:[#allocation83_spill] sm:$0xff] }
 0x118   :  { %713 = vmatpush.msra.mxu1 %v2820_v5  ;;  %753 = vmatpush.msra.mxu3 %v2821_v23  ;;  %v2879_v5 = vld [vmem:[#allocation84_spill] sm:$0xff]  ;;  %v2880_v23 = vld [vmem:[#allocation91_spill] sm:$0xff] }
 0x119   :  { %599 = vmatmul.f32.vlgmr.msrb.gmra.mxu1 %v2307_v45  ;;  %639 = vmatmul.f32.vlgmr.msrb.gmra.mxu3 %v2307_v45  ;;  %v2888_v48 = vld [vmem:[#allocation107_spill] sm:$0xff] }
 0x11a   :  { %714 = vmatpush.msra.mxu1 %v2822_v7  ;;  %754 = vmatpush.msra.mxu3 %v2823_v9  ;;  %v2881_v7 = vld [vmem:[#allocation88_spill] sm:$0xff]  ;;  %v2882_v9 = vld [vmem:[#allocation95_spill] sm:$0xff] }
 0x11b   :  { %817 = vmatpush.msrb.mxu2 %v2833_v56  ;;  %v2892_v56 = vld [vmem:[#allocation114_spill] sm:$0xff] }
 0x11c   :  { %715 = vmatpush.msra.mxu1 %v2826_v43  ;;  %755 = vmatpush.msra.mxu3 %v2827_v46  ;;  %v2885_v43 = vld [vmem:[#allocation96_spill] sm:$0xff]  ;;  %v2886_v46 = vld [vmem:[#allocation103_spill] sm:$0xff] }
 0x11d   :  { %818 = vmatpush.msrb.mxu2 %v2837_v10 }
 0x11e   :  { %716 = vmatpush.msra.mxu1 %v2830_v49  ;;  %756 = vmatpush.msra.mxu3 %v2831_v50  ;;  %v2889_v49 = vld [vmem:[#allocation104_spill] sm:$0xff]  ;;  %v2890_v50 = vld [vmem:[#allocation111_spill] sm:$0xff] }
 0x11f   :  { %819 = vmatpush.msrb.mxu2 %v2795_v54  ;;  %v2848_v54 = vld [vmem:[#allocation105_spill] sm:$0xff] }
 0x120   :  { %717 = vmatpush.msra.mxu1 %v2834_v62  ;;  %757 = vmatpush.msra.mxu3 %v2835_v15  ;;  %v2893_v62 = vld [vmem:[#allocation112_spill] sm:$0xff]  ;;  %v2894_v15 = vld [vmem:[#allocation117_spill] sm:$0xff] }
 0x121   :  { %820 = vmatpush.msrb.mxu2 %v2799_v22  ;;  %782 = vmatpush.msrb.mxu0 %v2848_v54  ;;  %v2852_v22 = vld [vmem:[#allocation109_spill] sm:$0xff] }
 0x122   :  { %718 = vmatpush.msra.mxu1 %v2838_v13  ;;  %758 = vmatpush.msra.mxu3 %v2839_v26 }
 0x123   :  { %821 = vmatpush.msrb.mxu2 %v2803_v42  ;;  %783 = vmatpush.msrb.mxu0 %v2852_v22  ;;  %v2856_v42 = vld [vmem:[#allocation113_spill] sm:$0xff]  ;;  %v1324_v22 = vld [vmem:[#allocation6 + $0x1c0] sm:$0xff] }
 0x124   :  { %719 = vmatpush.msra.mxu1 %v2841_v2  ;;  %759 = vmatpush.msra.mxu3 %v2842_v6 }
 0x125   :  { %822 = vmatpush.msrb.mxu2 %v2849_v14  ;;  %784 = vmatpush.msrb.mxu0 %v2856_v42 }
 0x126   :  { %720 = vmatpush.msra.mxu1 %v2844_v11  ;;  %760 = vmatpush.msra.mxu3 %v2845_v12 }
 0x127   :  { %823 = vmatpush.msrb.mxu2 %v2853_v21  ;;  %785 = vmatpush.msrb.mxu0 %v2860_v57  ;;  %v1325_v21 = vld [vmem:[#allocation6 + $0x1c8] sm:$0xff] }
 0x128   :  { %721 = vmatpush.msra.mxu1 %v2846_v16  ;;  %761 = vmatpush.msra.mxu3 %v2847_v17  ;;  %v689_v17 = vld [vmem:[#allocation3 + $0x10] sm:$0xff] }
 0x129   :  { %824 = vmatpush.msrb.mxu2 %v2857_v25  ;;  %706 = vmatmul.f32.vlgmr.msra.gmra.mxu0 %v689_v17 }
 0x12a   :  { %722 = vmatpush.msra.mxu1 %v2850_v35  ;;  %762 = vmatpush.msra.mxu3 %v2851_v20  ;;  %v1322_v35 = vld [vmem:[#allocation6 + $0x1e0] sm:$0xff]  ;;  %v1323_v20 = vld [vmem:[#allocation6 + $0x1e8] sm:$0xff] }
 0x12b   :  { %825 = vmatpush.msrb.mxu2 %v2861_v28  ;;  %897 = vmatpush.msra.mxu0 %v1322_v35  ;;  %v1329_v28 = vld [vmem:[#allocation6 + $0x188] sm:$0xff] }
 0x12c   :  { %723 = vmatpush.msra.mxu1 %v2854_v24  ;;  %763 = vmatpush.msra.mxu3 %v2855_v19  ;;  %v1326_v24 = vld [vmem:[#allocation6 + $0x1a0] sm:$0xff]  ;;  %v1327_v19 = vld [vmem:[#allocation6 + $0x1a8] sm:$0xff] }
 0x12d   :  { %746 = vmatmul.f32.vlgmr.msra.gmra.mxu2 %v689_v17  ;;  %898 = vmatpush.msra.mxu0 %v1324_v22  ;;  %v1349_v22 = vld [vmem:[#allocation6 + $0x48] sm:$0xff] }
 0x12e   :  { %724 = vmatpush.msra.mxu1 %v2858_v52  ;;  %764 = vmatpush.msra.mxu3 %v2859_v53  ;;  %v1328_v53 = vld [vmem:[#allocation6 + $0x180] sm:$0xff] }
 0x12f   :  { %937 = vmatpush.msra.mxu2 %v1323_v20  ;;  %899 = vmatpush.msra.mxu0 %v1326_v24  ;;  %v1348_v20 = vld [vmem:[#allocation6 + $0x40] sm:$0xff] }
 0x130   :  { %725 = vmatpush.msra.mxu1 %v2862_v58  ;;  %765 = vmatpush.msra.mxu3 %v2863_v29  ;;  %v1330_v29 = vld [vmem:[#allocation6 + $0x160] sm:$0xff] }
 0x131   :  { %938 = vmatpush.msra.mxu2 %v1325_v21  ;;  %900 = vmatpush.msra.mxu0 %v1328_v53  ;;  %v1350_v24 = vld [vmem:[#allocation6 + $0x20] sm:$0xff] }
 0x132   :  { %790 = vmatpush.msrb.mxu1 %v2864_v61  ;;  %830 = vmatpush.msrb.mxu3 %v2865_v32  ;;  %v1331_v61 = vld [vmem:[#allocation6 + $0x168] sm:$0xff] }
 0x133   :  { %939 = vmatpush.msra.mxu2 %v1327_v19  ;;  %786 = vmatmul.f32.vlgmr.msrb.gmra.mxu0 %v689_v17  ;;  %v1351_v19 = vld [vmem:[#allocation6 + $0x28] sm:$0xff] }
 0x134   :  { %791 = vmatpush.msrb.mxu1 %v2866_v33  ;;  %831 = vmatpush.msrb.mxu3 %v2867_v63  ;;  %v1332_v63 = vld [vmem:[#allocation6 + $0x140] sm:$0xff] }
 0x135   :  { %940 = vmatpush.msra.mxu2 %v1329_v28  ;;  %901 = vmatpush.msra.mxu0 %v1330_v29  ;;  %v1352_v28 = vld [vmem:[#allocation6] sm:$0xff]  ;;  %v1354_v29 = vld [vmem:[#allocation6 + $0x1f0] sm:$0xff] }
 0x136   :  { %792 = vmatpush.msrb.mxu1 %v2868_v59  ;;  %832 = vmatpush.msrb.mxu3 %v2869_v36  ;;  %v1333_v59 = vld [vmem:[#allocation6 + $0x148] sm:$0xff] }
 0x137   :  { %826 = vmatmul.f32.vlgmr.msrb.gmra.mxu2 %v689_v17  ;;  %902 = vmatpush.msra.mxu0 %v1332_v63  ;;  %v1357_v63 = vld [vmem:[#allocation6 + $0x1d8] sm:$0xff] }
 0x138   :  { %793 = vmatpush.msrb.mxu1 %v2870_v37  ;;  %833 = vmatpush.msrb.mxu3 %v2871_v40 }
 0x139   :  { %941 = vmatpush.msra.mxu2 %v1331_v61  ;;  %v1355_v61 = vld [vmem:[#allocation6 + $0x1f8] sm:$0xff] }
 0x13a   :  { %794 = vmatpush.msrb.mxu1 %v2872_v41  ;;  %834 = vmatpush.msrb.mxu3 %v2873_v44  ;;  %v1334_v41 = vld [vmem:[#allocation6 + $0x120] sm:$0xff]  ;;  %v1335_v44 = vld [vmem:[#allocation6 + $0x128] sm:$0xff] }
 0x13b   :  { %942 = vmatpush.msra.mxu2 %v1333_v59  ;;  %903 = vmatpush.msra.mxu0 %v1334_v41  ;;  %v1358_v59 = vld [vmem:[#allocation6 + $0x3e0] sm:$0xff]  ;;  %v1363_v41 = vld [vmem:[#allocation6 + $0x3c8] sm:$0xff] }
 0x13c   :  { %795 = vmatpush.msrb.mxu1 %v2874_v27  ;;  %835 = vmatpush.msrb.mxu3 %v2875_v30 }
 0x13d   :  { %v500_v10 = vpop.f32.mrf.mxu0  ;;  %943 = vmatpush.msra.mxu2 %v1335_v44  ;;  %v1364_v44 = vld [vmem:[#allocation6 + $0x190] sm:$0xff] }
 0x13e   :  { %796 = vmatpush.msrb.mxu1 %v2876_v31  ;;  %836 = vmatpush.msrb.mxu3 %v2877_v34  ;;  %v501_v13 = vadd.f32 %v500_v10, %v2239_v55 }
 0x140   :  { %797 = vmatpush.msrb.mxu1 %v2878_v3  ;;  %837 = vmatpush.msrb.mxu3 %v2879_v5 }
 0x142   :  { %798 = vmatpush.msrb.mxu1 %v2880_v23  ;;  %838 = vmatpush.msrb.mxu3 %v2881_v7  ;;  %v1336_v23 = vld [vmem:[#allocation6 + $0x100] sm:$0xff]  ;;  %v1337_v7 = vld [vmem:[#allocation6 + $0x108] sm:$0xff] }
 0x143   :  { %v540_v0 = vpop.f32.mrf.mxu2  ;;  %904 = vmatpush.msra.mxu0 %v1336_v23  ;;  %944 = vmatpush.msra.mxu2 %v1337_v7  ;;  %v1371_v23 = vld [vmem:[#allocation6 + $0x388] sm:$0xff]  ;;  %v1372_v7 = vld [vmem:[#allocation6 + $0x360] sm:$0xff] }
 0x144   :  { %799 = vmatpush.msrb.mxu1 %v2882_v9  ;;  %839 = vmatpush.msrb.mxu3 %v2883_v18  ;;  %v541_v8 = vadd.f32 %v540_v0, %v2242_v60  ;;  %v1342_v0 = vld [vmem:[#allocation6 + $0xa0] sm:$0xff] }
 0x145   :  { %v580_v36 = vpop.f32.mrf.mxu0 }
 0x146   :  { %800 = vmatpush.msrb.mxu1 %v2884_v38  ;;  %840 = vmatpush.msrb.mxu3 %v2885_v43  ;;  %v581_v3 = vadd.f32 %v580_v36, %v2262_v1  ;;  %v1360_v36 = vld [vmem:[#allocation6 + $0x1b0] sm:$0xff] }
 0x148   :  { %801 = vmatpush.msrb.mxu1 %v2886_v46  ;;  %841 = vmatpush.msrb.mxu3 %v2887_v47  ;;  %v1338_v46 = vld [vmem:[#allocation6 + $0xe0] sm:$0xff]  ;;  %v1339_v47 = vld [vmem:[#allocation6 + $0xe8] sm:$0xff] }
 0x149   :  { %905 = vmatpush.msra.mxu0 %v1338_v46  ;;  %945 = vmatpush.msra.mxu2 %v1339_v47  ;;  %v1377_v46 = vld [vmem:[#allocation6 + $0x348] sm:$0xff]  ;;  %v1378_v47 = vld [vmem:[#allocation6 + $0x130] sm:$0xff] }
 0x14a   :  { %802 = vmatpush.msrb.mxu1 %v2888_v48  ;;  %842 = vmatpush.msrb.mxu3 %v2889_v49 }
 0x14b   :  { %v620_v33 = vpop.f32.mrf.mxu2 }
 0x14c   :  { %803 = vmatpush.msrb.mxu1 %v2890_v50  ;;  %843 = vmatpush.msrb.mxu3 %v2891_v51  ;;  %v621_v27 = vadd.f32 %v620_v33, %v2264_v4  ;;  %v1356_v33 = vld [vmem:[#allocation6 + $0x1d0] sm:$0xff] }
 0x14e   :  { %804 = vmatpush.msrb.mxu1 %v2892_v56  ;;  %844 = vmatpush.msrb.mxu3 %v2893_v62  ;;  %v1340_v62 = vld [vmem:[#allocation6 + $0xc0] sm:$0xff] }
 0x14f   :  { %906 = vmatpush.msra.mxu0 %v1340_v62  ;;  %v1384_v62 = vld [vmem:[#allocation6 + $0x300] sm:$0xff] }
 0x150   :  { %805 = vmatpush.msrb.mxu1 %v2894_v15  ;;  %845 = vmatpush.msrb.mxu3 %v2895_v39  ;;  %v1341_v15 = vld [vmem:[#allocation6 + $0xc8] sm:$0xff] }
 0x151   :  { %946 = vmatpush.msra.mxu2 %v1341_v15  ;;  %907 = vmatpush.msra.mxu0 %v1342_v0  ;;  %v1385_v15 = vld [vmem:[#allocation6 + $0x308] sm:$0xff]  ;;  %v1390_v0 = vld [vmem:[#allocation6 + $0xd0] sm:$0xff] }
 0x18e   :  { %v520_v26 = vpop.f32.mrf.mxu1 }
 0x18f   :  { %v521_v2 = vadd.f32 %v520_v26, %v501_v13 }
 0x191   :  { %v1259_v6 = vmul.f32 -1.442695, %v521_v2  ;;  %v1343_v2 = vld [vmem:[#allocation6 + $0xa8] sm:$0xff] }
 0x192   :  { %947 = vmatpush.msra.mxu2 %v1343_v2  ;;  %v1391_v2 = vld [vmem:[#allocation6 + $0xd8] sm:$0xff] }
 0x193   :  { %1292 = vpow2.f32 %v1259_v6 }
 0x194   :  { %v560_v11 = vpop.f32.mrf.mxu3 }
 0x195   :  { %v561_v12 = vadd.f32 %v560_v11, %v541_v8  ;;  %v1344_v11 = vld [vmem:[#allocation6 + $0x80] sm:$0xff] }
 0x196   :  { %v600_v18 = vpop.f32.mrf.mxu1  ;;  %908 = vmatpush.msra.mxu0 %v1344_v11  ;;  %v1394_v11 = vld [vmem:[#allocation6 + $0xb0] sm:$0xff] }
 0x197   :  { %v1260_v16 = vmul.f32 -1.442695, %v561_v12  ;;  %v601_v51 = vadd.f32 %v600_v18, %v581_v3  ;;  %v1345_v12 = vld [vmem:[#allocation6 + $0x88] sm:$0xff]  ;;  %v1369_v3 = vld [vmem:[#allocation6 + $0x178] sm:$0xff]  ;;  %v1374_v18 = vld [vmem:[#allocation6 + $0x150] sm:$0xff] }
 0x198   :  { %948 = vmatpush.msra.mxu2 %v1345_v12  ;;  %v1395_v12 = vld [vmem:[#allocation6 + $0xb8] sm:$0xff] }
 0x199   :  { %v1293_v54 = vpop.eup %1292  ;;  %1294 = vpow2.f32 %v1260_v16 }
 0x19a   :  { %v2409_v14 = vadd.f32 1.0, %v1293_v54  ;;  %v1346_v54 = vld [vmem:[#allocation6 + $0x60] sm:$0xff] }
 0x19b   :  { %909 = vmatpush.msra.mxu0 %v1346_v54  ;;  %v1398_v54 = vld [vmem:[#allocation6 + $0x90] sm:$0xff] }
 0x19c   :  { %1296 = vrcp.f32 %v2409_v14  ;;  %v658_v40 = vand.u32 2147483648, %v2409_v14  ;;  %v656_v31 = vand.u32 2147483647, %v2409_v14  ;;  %v640_v5 = vpop.f32.mrf.mxu3  ;;  %vm652_vm9 = vweird.f32 %v2409_v14 }
 0x19d   :  { %v641_v49 = vadd.f32 %v640_v5, %v621_v27  ;;  %910 = vmatpush.msra.mxu0 %v1348_v20  ;;  %v1365_v27 = vld [vmem:[#allocation6 + $0x198] sm:$0xff]  ;;  %v1370_v5 = vld [vmem:[#allocation6 + $0x380] sm:$0xff]  ;;  %v1401_v20 = vld [vmem:[#allocation6 + $0x288] sm:$0xff] }
 0x19e   :  { %v659_v43 = vor.u32 1.1754944e-38, %v658_v40  ;;  %vm657_vm11 = vcmp.eq.f32.partialorder %v656_v31, 8.507059e+37  ;;  %v1362_v40 = vld [vmem:[#allocation6 + $0x3c0] sm:$0xff]  ;;  %v1367_v31 = vld [vmem:[#allocation6 + $0x3a8] sm:$0xff] }
 0x19f   :  { %v1295_v25 = vpop.eup %1294  ;;  %911 = vmatpush.msra.mxu0 %v1350_v24  ;;  %v1404_v24 = vld [vmem:[#allocation6 + $0x260] sm:$0xff] }
 0x1a0   :  { %v2412_v52 = vadd.f32 1.0, %v1295_v25 }
 0x1a1   :  { %912 = vmatpush.msra.mxu0 %v1352_v28  ;;  %v1409_v28 = vld [vmem:[#allocation6 + $0x248] sm:$0xff] }
 0x1a2   :  { %v1297_v58 = vpop.eup %1296  ;;  %1298 = vrcp.f32 %v2412_v52  ;;  %v677_v10 = vand.u32 2147483648, %v2412_v52  ;;  %v675_v26 = vand.u32 2147483647, %v2412_v52  ;;  %vm671_vm13 = vweird.f32 %v2412_v52 }
 0x1a3   :  { %v648_v32 = vmul.f32 %v1297_v58, %v2409_v14  ;;  %vm653_vm8 = vweird.f32 %v1297_v58  ;;  %v1347_v14 = vld [vmem:[#allocation6 + $0x68] sm:$0xff]  ;;  %977 = vmatpush.msrb.mxu0 %v1354_v29  ;;  %v1411_v29 = vld [vmem:[#allocation6 + $0x220] sm:$0xff] }
 0x1a4   :  { %vm654_vm10 = vmor %vm652_vm9, %vm653_vm8  ;;  %v678_v16 = vor.u32 1.1754944e-38, %v677_v10  ;;  %vm676_vm15 = vcmp.eq.f32.partialorder %v675_v26, 8.507059e+37  ;;  %949 = vmatpush.msra.mxu2 %v1347_v14  ;;  %v1387_v10 = vld [vmem:[#allocation6 + $0xf8] sm:$0xff]  ;;  %v1389_v26 = vld [vmem:[#allocation6 + $0x2e8] sm:$0xff] }
 0x1a5   :  { %v649_v37 = vsub.f32 1.0, %v648_v32  ;;  %978 = vmatpush.msrb.mxu0 %v1356_v33  ;;  %v1399_v14 = vld [vmem:[#allocation6 + $0x98] sm:$0xff] }
 0x1a6   :  { %950 = vmatpush.msra.mxu2 %v1349_v22  ;;  %v1402_v22 = vld [vmem:[#allocation6 + $0x70] sm:$0xff]  ;;  %v1413_v33 = vld [vmem:[#allocation6 + $0x18] sm:$0xff] }
 0x1a7   :  { %v650_v30 = vmul.f32 %v1297_v58, %v649_v37  ;;  %979 = vmatpush.msrb.mxu0 %v1360_v36  ;;  %v1361_v37 = vld [vmem:[#allocation6 + $0x1b8] sm:$0xff] }
 0x1a8   :  { %v1299_v34 = vpop.eup %1298  ;;  %951 = vmatpush.msra.mxu2 %v1351_v19  ;;  %v1405_v19 = vld [vmem:[#allocation6 + $0x268] sm:$0xff]  ;;  %v1417_v36 = vld [vmem:[#allocation6 + $0x3f8] sm:$0xff] }
 0x1a9   :  { %v667_v9 = vmul.f32 %v1299_v34, %v2412_v52  ;;  %v651_v38 = vadd.f32 %v1297_v58, %v650_v30  ;;  %vm672_vm12 = vweird.f32 %v1299_v34  ;;  %980 = vmatpush.msrb.mxu0 %v1364_v44  ;;  %v1366_v30 = vld [vmem:[#allocation6 + $0x3a0] sm:$0xff]  ;;  %v1422_v44 = vld [vmem:[#allocation6 + $0x390] sm:$0xff] }
 0x1aa   :  { %vm673_vm14 = vmor %vm671_vm13, %vm672_vm12 }
 0x1ab   :  { %v668_v48 = vsub.f32 1.0, %v667_v9  ;;  %v655_v50 = vsel %vm654_vm10, %v1297_v58, %v651_v38  ;;  %v1353_v58 = vld [vmem:[#allocation6 + $0x8] sm:$0xff]  ;;  %v1375_v38 = vld [vmem:[#allocation6 + $0x158] sm:$0xff] }
 0x1ac   :  { %v660_v56 = vsel %vm657_vm11, %v659_v43, %v655_v50  ;;  %952 = vmatpush.msra.mxu2 %v1353_v58  ;;  %v1373_v9 = vld [vmem:[#allocation6 + $0x368] sm:$0xff]  ;;  %v1376_v43 = vld [vmem:[#allocation6 + $0x340] sm:$0xff]  ;;  %v1410_v58 = vld [vmem:[#allocation6 + $0x38] sm:$0xff] }
 0x1ad   :  { %v669_v39 = vmul.f32 %v1299_v34, %v668_v48  ;;  %v681_v13 = vmul.f32 %v660_v56, %v641_v49  ;;  %v1379_v48 = vld [vmem:[#allocation6 + $0x138] sm:$0xff]  ;;  %v1380_v49 = vld [vmem:[#allocation6 + $0x320] sm:$0xff]  ;;  %v1381_v50 = vld [vmem:[#allocation6 + $0x328] sm:$0xff] }
 0x1ae   :  { %1017 = vmatpush.msrb.mxu2 %v1355_v61  ;;  %v1383_v56 = vld [vmem:[#allocation6 + $0x118] sm:$0xff]  ;;  %v1412_v61 = vld [vmem:[#allocation6 + $0x228] sm:$0xff] }
 0x1af   :  { %v670_v6 = vadd.f32 %v1299_v34, %v669_v39  ;;  %v682_v8 = vadd.f32 %v681_v13, %v601_v51  ;;  %v1382_v51 = vld [vmem:[#allocation6 + $0x110] sm:$0xff]  ;;  %v1388_v13 = vld [vmem:[#allocation6 + $0x2e0] sm:$0xff] }
 0x1b0   :  { %1018 = vmatpush.msrb.mxu2 %v1357_v63  ;;  %v1386_v39 = vld [vmem:[#allocation6 + $0xf0] sm:$0xff]  ;;  %v1414_v63 = vld [vmem:[#allocation6 + $0x200] sm:$0xff] }
 0x1b1   :  { %v674_v17 = vsel %vm673_vm14, %v1299_v34, %v670_v6  ;;  %1300 = vtanh.f32 %v682_v8  ;;  %v1368_v34 = vld [vmem:[#allocation6 + $0x170] sm:$0xff]  ;;  %v1392_v6 = vld [vmem:[#allocation6 + $0x2c0] sm:$0xff]  ;;  %v1393_v8 = vld [vmem:[#allocation6 + $0x2c8] sm:$0xff] }
 0x1b2   :  { %v679_v35 = vsel %vm676_vm15, %v678_v16, %v674_v17  ;;  %1019 = vmatpush.msrb.mxu2 %v1361_v37  ;;  %981 = vmatpush.msrb.mxu0 %v1368_v34  ;;  %v1396_v16 = vld [vmem:[#allocation6 + $0x2a0] sm:$0xff]  ;;  %v1397_v17 = vld [vmem:[#allocation6 + $0x2a8] sm:$0xff]  ;;  %v1418_v37 = vld [vmem:[#allocation6 + $0x3d0] sm:$0xff] }
 0x1b3   :  { %v684_v21 = vsub.f32 1.0, %v679_v35  ;;  %v686_v53 = vmul.f32 %v679_v35, %v2307_v45  ;;  %v1359_v45 = vld [vmem:[#allocation6 + $0x3e8] sm:$0xff]  ;;  %v1400_v35 = vld [vmem:[#allocation6 + $0x280] sm:$0xff]  ;;  %v1427_v34 = vld [vmem:[#allocation6 + $0x358] sm:$0xff] }
 0x1b4   :  { %1020 = vmatpush.msrb.mxu2 %v1365_v27  ;;  %982 = vmatpush.msrb.mxu0 %v1374_v18  ;;  %v1424_v27 = vld [vmem:[#allocation6 + $0x370] sm:$0xff]  ;;  %v1433_v18 = vld [vmem:[#allocation6 + $0x2f8] sm:$0xff] }
 0x1b6   :  { %1021 = vmatpush.msrb.mxu2 %v1369_v3  ;;  %983 = vmatpush.msrb.mxu0 %v1378_v47  ;;  %v1428_v3 = vld [vmem:[#allocation6 + $0x330] sm:$0xff]  ;;  %v1437_v47 = vld [vmem:[#allocation6 + $0x2b8] sm:$0xff] }
 0x1b7   :  { %v1301_v25 = vpop.eup %1300 }
 0x1b8   :  { %v685_v52 = vmul.f32 %v1301_v25, %v684_v21  ;;  %1022 = vmatpush.msrb.mxu2 %v1375_v38  ;;  %984 = vmatpush.msrb.mxu0 %v1382_v51  ;;  %v1403_v21 = vld [vmem:[#allocation6 + $0x78] sm:$0xff]  ;;  %v1406_v25 = vld [vmem:[#allocation6 + $0x50] sm:$0xff] }
 0x1b9   :  { %v1434_v38 = vld [vmem:[#allocation6 + $0x2d0] sm:$0xff]  ;;  %v1441_v51 = vld [vmem:[#allocation6 + $0x278] sm:$0xff] }
 0x1ba   :  { %v2426_v32 = vadd.f32 %v686_v53, %v685_v52  ;;  %1023 = vmatpush.msrb.mxu2 %v1379_v48  ;;  %985 = vmatpush.msrb.mxu0 %v1386_v39  ;;  %v1407_v52 = vld [vmem:[#allocation6 + $0x58] sm:$0xff]  ;;  %v1408_v53 = vld [vmem:[#allocation6 + $0x240] sm:$0xff]  ;;  %v1438_v48 = vld [vmem:[#allocation6 + $0x290] sm:$0xff] }
 0x1bb   :  { %v1445_v39 = vld [vmem:[#allocation6 + $0x238] sm:$0xff] }
 0x1bc   :  { %726 = vmatmul.f32.vlgmr.msra.gmra.mxu1 %v2426_v32  ;;  %766 = vmatmul.f32.vlgmr.msra.gmra.mxu3 %v2426_v32 }
 0x1bd   :  { %917 = vmatpush.msra.mxu1 %v1358_v59  ;;  %957 = vmatpush.msra.mxu3 %v1359_v45  ;;  %v1415_v59 = vld [vmem:[#allocation6 + $0x208] sm:$0xff]  ;;  %v1416_v45 = vld [vmem:[#allocation6 + $0x3f0] sm:$0xff] }
 0x1be   :  { %1024 = vmatpush.msrb.mxu2 %v1383_v56  ;;  %986 = vmatpush.msrb.mxu0 %v1390_v0  ;;  %v1442_v56 = vld [vmem:[#allocation6 + $0x250] sm:$0xff] }
 0x1bf   :  { %918 = vmatpush.msra.mxu1 %v1362_v40  ;;  %958 = vmatpush.msra.mxu3 %v1363_v41  ;;  %v1420_v40 = vld [vmem:[#allocation6 + $0x3b0] sm:$0xff]  ;;  %v1421_v41 = vld [vmem:[#allocation6 + $0x3b8] sm:$0xff] }
 0x1c0   :  { %1025 = vmatpush.msrb.mxu2 %v1387_v10  ;;  %987 = vmatpush.msrb.mxu0 %v1394_v11  ;;  %v1446_v10 = vld [vmem:[#allocation6 + $0x210] sm:$0xff] }
 0x1c1   :  { %919 = vmatpush.msra.mxu1 %v1366_v30  ;;  %959 = vmatpush.msra.mxu3 %v1367_v31  ;;  %v1425_v30 = vld [vmem:[#allocation6 + $0x378] sm:$0xff]  ;;  %v1426_v31 = vld [vmem:[#allocation6 + $0x350] sm:$0xff] }
 0x1c2   :  { %1026 = vmatpush.msrb.mxu2 %v1391_v2  ;;  %988 = vmatpush.msrb.mxu0 %v1398_v54 }
 0x1c3   :  { %920 = vmatpush.msra.mxu1 %v1370_v5  ;;  %960 = vmatpush.msra.mxu3 %v1371_v23  ;;  %v1429_v5 = vld [vmem:[#allocation6 + $0x338] sm:$0xff]  ;;  %v1430_v23 = vld [vmem:[#allocation6 + $0x310] sm:$0xff] }
 0x1c4   :  { %806 = vmatmul.f32.vlgmr.msrb.gmra.mxu1 %v2426_v32  ;;  %846 = vmatmul.f32.vlgmr.msrb.gmra.mxu3 %v2426_v32 }
 0x1c5   :  { %921 = vmatpush.msra.mxu1 %v1372_v7  ;;  %961 = vmatpush.msra.mxu3 %v1373_v9  ;;  %v1431_v7 = vld [vmem:[#allocation6 + $0x318] sm:$0xff]  ;;  %v1432_v9 = vld [vmem:[#allocation6 + $0x2f0] sm:$0xff] }
 0x1c6   :  { %1027 = vmatpush.msrb.mxu2 %v1395_v12  ;;  %989 = vmatpush.msrb.mxu0 %v1402_v22 }
 0x1c7   :  { %922 = vmatpush.msra.mxu1 %v1376_v43  ;;  %962 = vmatpush.msra.mxu3 %v1377_v46  ;;  %v1435_v43 = vld [vmem:[#allocation6 + $0x2d8] sm:$0xff]  ;;  %v1436_v46 = vld [vmem:[#allocation6 + $0x2b0] sm:$0xff] }
 0x1c8   :  { %1028 = vmatpush.msrb.mxu2 %v1399_v14  ;;  %990 = vmatpush.msrb.mxu0 %v1406_v25  ;;  %v896_v14 = vld [vmem:[#allocation3 + $0x18] sm:$0xff] }
 0x1c9   :  { %923 = vmatpush.msra.mxu1 %v1380_v49  ;;  %963 = vmatpush.msra.mxu3 %v1381_v50  ;;  %v1439_v49 = vld [vmem:[#allocation6 + $0x298] sm:$0xff]  ;;  %v1440_v50 = vld [vmem:[#allocation6 + $0x270] sm:$0xff] }
 0x1ca   :  { %1029 = vmatpush.msrb.mxu2 %v1403_v21  ;;  %991 = vmatpush.msrb.mxu0 %v2856_v42  ;;  %v1419_v42 = vld [vmem:[#allocation6 + $0x3d8] sm:$0xff] }
 0x1cb   :  { %924 = vmatpush.msra.mxu1 %v1384_v62  ;;  %964 = vmatpush.msra.mxu3 %v1385_v15  ;;  %v1443_v62 = vld [vmem:[#allocation6 + $0x258] sm:$0xff]  ;;  %v1444_v15 = vld [vmem:[#allocation6 + $0x230] sm:$0xff] }
 0x1cc   :  { %1030 = vmatpush.msrb.mxu2 %v1407_v52  ;;  %992 = vmatpush.msrb.mxu0 %v2860_v57  ;;  %v1423_v57 = vld [vmem:[#allocation6 + $0x398] sm:$0xff] }
 0x1cd   :  { %925 = vmatpush.msra.mxu1 %v1388_v13  ;;  %965 = vmatpush.msra.mxu3 %v1389_v26  ;;  %v1447_v13 = vld [vmem:[#allocation6 + $0x218] sm:$0xff]  ;;  %v707_v26 = vpop.f32.mrf.mxu0 }
 0x1ce   :  { %1031 = vmatpush.msrb.mxu2 %v1410_v58  ;;  %v708_v0 = vadd.f32 %v707_v26, %v2239_v55  ;;  %913 = vmatmul.f32.vlgmr.msra.gmra.mxu0 %v896_v14 }
 0x1cf   :  { %926 = vmatpush.msra.mxu1 %v1392_v6  ;;  %966 = vmatpush.msra.mxu3 %v1393_v8  ;;  %v747_v6 = vpop.f32.mrf.mxu2 }
 0x1d0   :  { %1032 = vmatpush.msrb.mxu2 %v1413_v33  ;;  %v748_v12 = vadd.f32 %v747_v6, %v2242_v60 }
 0x1d1   :  { %927 = vmatpush.msra.mxu1 %v1396_v16  ;;  %967 = vmatpush.msra.mxu3 %v1397_v17 }
 0x1d2   :  { %953 = vmatmul.f32.vlgmr.msra.gmra.mxu2 %v896_v14 }
 0x1d3   :  { %928 = vmatpush.msra.mxu1 %v1400_v35  ;;  %968 = vmatpush.msra.mxu3 %v1401_v20 }
 0x1d5   :  { %929 = vmatpush.msra.mxu1 %v1404_v24  ;;  %969 = vmatpush.msra.mxu3 %v1405_v19  ;;  %v787_v52 = vpop.f32.mrf.mxu0 }
 0x1d6   :  { %993 = vmatmul.f32.vlgmr.msrb.gmra.mxu0 %v896_v14 }
 0x1d7   :  { %930 = vmatpush.msra.mxu1 %v1408_v53  ;;  %970 = vmatpush.msra.mxu3 %v1409_v28  ;;  %v827_v25 = vpop.f32.mrf.mxu2 }
 0x1d8   :  { %v828_v58 = vadd.f32 %v827_v25, %v2264_v4  ;;  %v1170_v25 = vld [vmem:[#allocation11 + $0x78] sm:$0xff] }
 0x1d9   :  { %931 = vmatpush.msra.mxu1 %v1411_v29  ;;  %971 = vmatpush.msra.mxu3 %v1412_v61 }
 0x1da   :  { %1033 = vmatmul.f32.vlgmr.msrb.gmra.mxu2 %v896_v14  ;;  %v1111_v14 = vld [vmem:[#allocation9 + $0x18] sm:$0xff] }
 0x1db   :  { %932 = vmatpush.msra.mxu1 %v1414_v63  ;;  %972 = vmatpush.msra.mxu3 %v1415_v59  ;;  %v788_v63 = vadd.f32 %v787_v52, %v2262_v1  ;;  %v1169_v52 = vld [vmem:[#allocation11 + $0x70] sm:$0xff] }
 0x1dd   :  { %997 = vmatpush.msrb.mxu1 %v1416_v45  ;;  %1037 = vmatpush.msrb.mxu3 %v1417_v36 }
 0x1df   :  { %998 = vmatpush.msrb.mxu1 %v1418_v37  ;;  %1038 = vmatpush.msrb.mxu3 %v1419_v42 }
 0x1e1   :  { %999 = vmatpush.msrb.mxu1 %v1420_v40  ;;  %1039 = vmatpush.msrb.mxu3 %v1421_v41 }
 0x1e3   :  { %1000 = vmatpush.msrb.mxu1 %v1422_v44  ;;  %1040 = vmatpush.msrb.mxu3 %v1423_v57 }
 0x1e5   :  { %1001 = vmatpush.msrb.mxu1 %v1424_v27  ;;  %1041 = vmatpush.msrb.mxu3 %v1425_v30 }
 0x1e7   :  { %1002 = vmatpush.msrb.mxu1 %v1426_v31  ;;  %1042 = vmatpush.msrb.mxu3 %v1427_v34 }
 0x1e9   :  { %1003 = vmatpush.msrb.mxu1 %v1428_v3  ;;  %1043 = vmatpush.msrb.mxu3 %v1429_v5 }
 0x1eb   :  { %1004 = vmatpush.msrb.mxu1 %v1430_v23  ;;  %1044 = vmatpush.msrb.mxu3 %v1431_v7 }
 0x1ed   :  { %1005 = vmatpush.msrb.mxu1 %v1432_v9  ;;  %1045 = vmatpush.msrb.mxu3 %v1433_v18 }
 0x1ef   :  { %1006 = vmatpush.msrb.mxu1 %v1434_v38  ;;  %1046 = vmatpush.msrb.mxu3 %v1435_v43 }
 0x1f1   :  { %1007 = vmatpush.msrb.mxu1 %v1436_v46  ;;  %1047 = vmatpush.msrb.mxu3 %v1437_v47 }
 0x1f3   :  { %1008 = vmatpush.msrb.mxu1 %v1438_v48  ;;  %1048 = vmatpush.msrb.mxu3 %v1439_v49  ;;  %v1123_v49 = vld [vmem:[#allocation9 + $0x78] sm:$0xff] }
 0x1f4   :  { %1135 = vmatpush.msra.mxu0 %v1123_v49 }
 0x1f5   :  { %1009 = vmatpush.msrb.mxu1 %v1440_v50  ;;  %1049 = vmatpush.msrb.mxu3 %v1441_v51  ;;  %v1122_v50 = vld [vmem:[#allocation9 + $0x70] sm:$0xff]  ;;  %v1121_v51 = vld [vmem:[#allocation9 + $0x68] sm:$0xff] }
 0x1f6   :  { %1136 = vmatpush.msra.mxu0 %v1122_v50 }
 0x1f7   :  { %1010 = vmatpush.msrb.mxu1 %v1442_v56  ;;  %1050 = vmatpush.msrb.mxu3 %v1443_v62  ;;  %v1120_v56 = vld [vmem:[#allocation9 + $0x60] sm:$0xff]  ;;  %v1119_v62 = vld [vmem:[#allocation9 + $0x58] sm:$0xff] }
 0x1f8   :  { %1137 = vmatpush.msra.mxu0 %v1121_v51 }
 0x1f9   :  { %1011 = vmatpush.msrb.mxu1 %v1444_v15  ;;  %1051 = vmatpush.msrb.mxu3 %v1445_v39  ;;  %v1118_v15 = vld [vmem:[#allocation9 + $0x50] sm:$0xff]  ;;  %v1117_v39 = vld [vmem:[#allocation9 + $0x48] sm:$0xff] }
 0x1fa   :  { %1138 = vmatpush.msra.mxu0 %v1120_v56  ;;  %v1161_v56 = vld [vmem:[#allocation11 + $0x30] sm:$0xff] }
 0x1fb   :  { %1012 = vmatpush.msrb.mxu1 %v1446_v10  ;;  %1052 = vmatpush.msrb.mxu3 %v1447_v13  ;;  %v1116_v13 = vld [vmem:[#allocation9 + $0x40] sm:$0xff] }
 0x1fc   :  { %1139 = vmatpush.msra.mxu0 %v1119_v62 }
 0x1fe   :  { %1140 = vmatpush.msra.mxu0 %v1118_v15  ;;  %v1160_v15 = vld [vmem:[#allocation11 + $0x28] sm:$0xff] }
 0x200   :  { %1141 = vmatpush.msra.mxu0 %v1117_v39 }
 0x202   :  { %1142 = vmatpush.msra.mxu0 %v1116_v13  ;;  %v1159_v13 = vld [vmem:[#allocation11 + $0x20] sm:$0xff] }
 0x239   :  { %v727_v2 = vpop.f32.mrf.mxu1 }
 0x23a   :  { %v728_v8 = vadd.f32 %v727_v2, %v708_v0  ;;  %v1115_v2 = vld [vmem:[#allocation9 + $0x38] sm:$0xff] }
 0x23b   :  { %1143 = vmatpush.msra.mxu0 %v1115_v2 }
 0x23c   :  { %v1261_v11 = vmul.f32 -1.442695, %v728_v8  ;;  %v1114_v8 = vld [vmem:[#allocation9 + $0x30] sm:$0xff] }
 0x23d   :  { %1144 = vmatpush.msra.mxu0 %v1114_v8 }
 0x23e   :  { %1302 = vpow2.f32 %v1261_v11 }
 0x23f   :  { %v767_v16 = vpop.f32.mrf.mxu3 }
 0x240   :  { %v768_v17 = vadd.f32 %v767_v16, %v748_v12  ;;  %v1113_v16 = vld [vmem:[#allocation9 + $0x28] sm:$0xff] }
 0x241   :  { %v807_v36 = vpop.f32.mrf.mxu1  ;;  %1145 = vmatpush.msra.mxu0 %v1113_v16 }
 0x242   :  { %v1262_v54 = vmul.f32 -1.442695, %v768_v17  ;;  %v808_v57 = vadd.f32 %v807_v36, %v788_v63  ;;  %v1112_v17 = vld [vmem:[#allocation9 + $0x20] sm:$0xff] }
 0x243   :  { %1146 = vmatpush.msra.mxu0 %v1112_v17 }
 0x244   :  { %v1303_v35 = vpop.eup %1302  ;;  %1304 = vpow2.f32 %v1262_v54 }
 0x245   :  { %v853_v20 = vadd.f32 1.0, %v1303_v35  ;;  %v1110_v35 = vld [vmem:[#allocation9 + $0x10] sm:$0xff]  ;;  %1147 = vmatpush.msra.mxu0 %v1111_v14  ;;  %v1156_v14 = vld [vmem:[#allocation11 + $0x8] sm:$0xff] }
 0x247   :  { %1306 = vrcp.f32 %v853_v20  ;;  %v865_v28 = vand.u32 2147483648, %v853_v20  ;;  %v863_v61 = vand.u32 2147483647, %v853_v20  ;;  %v847_v59 = vpop.f32.mrf.mxu3  ;;  %vm859_vm1 = vweird.f32 %v853_v20  ;;  %1148 = vmatpush.msra.mxu0 %v1110_v35  ;;  %v1211_v35 = vld [vmem:[#allocation12 + $0x78] sm:$0xff] }
 0x248   :  { %v848_v41 = vadd.f32 %v847_v59, %v828_v58  ;;  %1216 = vmatpush.msra.mxu2 %v1211_v35 }
 0x249   :  { %v866_v42 = vor.u32 1.1754944e-38, %v865_v28  ;;  %vm864_vm3 = vcmp.eq.f32.partialorder %v863_v61, 8.507059e+37  ;;  %v1637_v28 = vmov 0  }
 0x24a   :  { %v1305_v22 = vpop.eup %1304  ;;  %1278 = vset.pattern.permute.xlu0 %v1637_v28  ;;  %v1200_v28 = vld [vmem:[#allocation12 + $0x20] sm:$0xff] }
 0x24b   :  { %v872_v21 = vadd.f32 1.0, %v1305_v22  ;;  %v1109_v22 = vld [vmem:[#allocation9 + $0x8] sm:$0xff] }
 0x24c   :  { %1149 = vmatpush.msra.mxu0 %v1109_v22  ;;  %v1209_v22 = vld [vmem:[#allocation12 + $0x68] sm:$0xff] }
 0x24d   :  { %v1307_v24 = vpop.eup %1306  ;;  %1308 = vrcp.f32 %v872_v21  ;;  %v884_v31 = vand.u32 2147483648, %v872_v21  ;;  %v882_v3 = vand.u32 2147483647, %v872_v21  ;;  %vm878_vm5 = vweird.f32 %v872_v21 }
 0x24e   :  { %v855_v19 = vmul.f32 %v1307_v24, %v853_v20  ;;  %vm860_vm0 = vweird.f32 %v1307_v24 }
 0x24f   :  { %vm861_vm2 = vmor %vm859_vm1, %vm860_vm0  ;;  %v885_v7 = vor.u32 1.1754944e-38, %v884_v31  ;;  %vm883_vm7 = vcmp.eq.f32.partialorder %v882_v3, 8.507059e+37 }
 0x250   :  { %v856_v53 = vsub.f32 1.0, %v855_v19  ;;  %v1108_v19 = vld [vmem:[#allocation9] sm:$0xff] }
 0x251   :  { %1150 = vmatpush.msra.mxu0 %v1108_v19  ;;  %v1205_v19 = vld [vmem:[#allocation12 + $0x48] sm:$0xff] }
 0x252   :  { %v857_v29 = vmul.f32 %v1307_v24, %v856_v53 }
 0x253   :  { %v1309_v33 = vpop.eup %1308 }
 0x254   :  { %v874_v45 = vmul.f32 %v1309_v33, %v872_v21  ;;  %v858_v37 = vadd.f32 %v1307_v24, %v857_v29  ;;  %vm879_vm4 = vweird.f32 %v1309_v33  ;;  %v1168_v29 = vld [vmem:[#allocation11 + $0x68] sm:$0xff] }
 0x255   :  { %vm880_vm6 = vmor %vm878_vm5, %vm879_vm4  ;;  %v954_v0 = vpop.f32.mrf.mxu2 }
 0x256   :  { %v875_v40 = vsub.f32 1.0, %v874_v45  ;;  %v862_v44 = vsel %vm861_vm2, %v1307_v24, %v858_v37  ;;  %v955_v12 = vadd.f32 %v954_v0, %v2242_v60  ;;  %v1124_v60 = vld [vmem:[%s2470_s2] sm:$0xff] }
 0x257   :  { %v867_v27 = vsel %vm864_vm3, %v866_v42, %v862_v44  ;;  %1128 = vperm.xlu0 %1278, %v1124_v60   ;;  %v1166_v45 = vld [vmem:[#allocation11 + $0x58] sm:$0xff]  ;;  %v1204_v60 = vld [vmem:[#allocation12 + $0x40] sm:$0xff] }
 0x258   :  { %v876_v30 = vmul.f32 %v1309_v33, %v875_v40  ;;  %v888_v34 = vmul.f32 %v867_v27, %v848_v41  ;;  %v1165_v40 = vld [vmem:[#allocation11 + $0x50] sm:$0xff]  ;;  %v1158_v0 = vld [vmem:[#allocation11 + $0x18] sm:$0xff] }
 0x25a   :  { %v877_v5 = vadd.f32 %v1309_v33, %v876_v30  ;;  %v889_v23 = vadd.f32 %v888_v34, %v808_v57  ;;  %v1164_v34 = vld [vmem:[#allocation11 + $0x48] sm:$0xff] }
 0x25c   :  { %v881_v9 = vsel %vm880_vm6, %v1309_v33, %v877_v5  ;;  %1310 = vtanh.f32 %v889_v23  ;;  %v1167_v33 = vld [vmem:[#allocation11 + $0x60] sm:$0xff] }
 0x25d   :  { %v886_v18 = vsel %vm883_vm7, %v885_v7, %v881_v9  ;;  %v1034_v59 = vpop.f32.mrf.mxu2  ;;  %v1163_v9 = vld [vmem:[#allocation11 + $0x40] sm:$0xff] }
 0x25e   :  { %v891_v38 = vsub.f32 1.0, %v886_v18  ;;  %v893_v47 = vmul.f32 %v886_v18, %v2426_v32  ;;  %v914_v32 = vpop.f32.mrf.mxu0  ;;  %v1035_v41 = vadd.f32 %v1034_v59, %v2264_v4 }
 0x25f   :  { %v915_v10 = vadd.f32 %v914_v32, %v2239_v55 }
 0x262   :  { %v1311_v43 = vpop.eup %1310 }
 0x263   :  { %v892_v46 = vmul.f32 %v1311_v43, %v891_v38 }
 0x265   :  { %v2439_v48 = vadd.f32 %v893_v47, %v892_v46  ;;  %v1162_v47 = vld [vmem:[#allocation11 + $0x38] sm:$0xff] }
 0x266   :  { %v994_v36 = vpop.f32.mrf.mxu0 }
 0x267   :  { %933 = vmatmul.f32.vlgmr.msra.gmra.mxu1 %v2439_v48  ;;  %973 = vmatmul.f32.vlgmr.msra.gmra.mxu3 %v2439_v48  ;;  %v995_v30 = vadd.f32 %v994_v36, %v2262_v1  ;;  %v1197_v36 = vld [vmem:[#allocation12 + $0x8] sm:$0xff] }
 0x268   :  { %1175 = vmatpush.msra.mxu1 %v1170_v25  ;;  %v1203_v25 = vld [vmem:[#allocation12 + $0x38] sm:$0xff] }
 0x26a   :  { %1176 = vmatpush.msra.mxu1 %v1169_v52  ;;  %v1202_v52 = vld [vmem:[#allocation12 + $0x30] sm:$0xff] }
 0x26c   :  { %1177 = vmatpush.msra.mxu1 %v1168_v29  ;;  %v1199_v29 = vld [vmem:[#allocation12 + $0x18] sm:$0xff] }
 0x26e   :  { %1178 = vmatpush.msra.mxu1 %v1167_v33 }
 0x26f   :  { %1013 = vmatmul.f32.vlgmr.msrb.gmra.mxu1 %v2439_v48  ;;  %1053 = vmatmul.f32.vlgmr.msrb.gmra.mxu3 %v2439_v48 }
 0x270   :  { %1179 = vmatpush.msra.mxu1 %v1166_v45  ;;  %v1198_v45 = vld [vmem:[#allocation12 + $0x10] sm:$0xff] }
 0x272   :  { %1180 = vmatpush.msra.mxu1 %v1165_v40 }
 0x274   :  { %1181 = vmatpush.msra.mxu1 %v1164_v34 }
 0x276   :  { %1182 = vmatpush.msra.mxu1 %v1163_v9 }
 0x278   :  { %1183 = vmatpush.msra.mxu1 %v1162_v47 }
 0x27a   :  { %1184 = vmatpush.msra.mxu1 %v1161_v56 }
 0x27c   :  { %1185 = vmatpush.msra.mxu1 %v1160_v15 }
 0x27e   :  { %1186 = vmatpush.msra.mxu1 %v1159_v13 }
 0x280   :  { %1187 = vmatpush.msra.mxu1 %v1158_v0 }
 0x2e4   :  { %v934_v26 = vpop.f32.mrf.mxu1 }
 0x2e5   :  { %v935_v6 = vadd.f32 %v934_v26, %v915_v10 }
 0x2e7   :  { %v1263_v11 = vmul.f32 -1.442695, %v935_v6 }
 0x2e9   :  { %1312 = vpow2.f32 %v1263_v11 }
 0x2ea   :  { %v974_v54 = vpop.f32.mrf.mxu3 }
 0x2eb   :  { %v975_v55 = vadd.f32 %v974_v54, %v955_v12  ;;  %v1106_v12 = vld [vmem:[%s2469_s1] sm:$0xff]  ;;  %v1157_v54 = vld [vmem:[#allocation11 + $0x10] sm:$0xff] }
 0x2ec   :  { %v1014_v5 = vpop.f32.mrf.mxu1  ;;  %1188 = vmatpush.msra.mxu1 %v1157_v54 }
 0x2ed   :  { %v1264_v20 = vmul.f32 -1.442695, %v975_v55  ;;  %v1015_v43 = vadd.f32 %v1014_v5, %v995_v30  ;;  %v1155_v55 = vld [vmem:[#allocation11] sm:$0xff] }
 0x2ee   :  { %1189 = vmatpush.msra.mxu1 %v1156_v14 }
 0x2ef   :  { %v1313_v21 = vpop.eup %1312  ;;  %1314 = vpow2.f32 %v1264_v20  ;;  %v1210_v20 = vld [vmem:[#allocation12 + $0x70] sm:$0xff] }
 0x2f0   :  { %v1060_v24 = vadd.f32 1.0, %v1313_v21  ;;  %1190 = vmatpush.msra.mxu1 %v1155_v55  ;;  %1217 = vmatpush.msra.mxu2 %v1210_v20  ;;  %v1208_v21 = vld [vmem:[#allocation12 + $0x60] sm:$0xff] }
 0x2f2   :  { %1316 = vrcp.f32 %v1060_v24  ;;  %v1072_v42 = vand.u32 2147483648, %v1060_v24  ;;  %v1070_v57 = vand.u32 2147483647, %v1060_v24  ;;  %v1054_v31 = vpop.f32.mrf.mxu3  ;;  %vm1066_vm9 = vweird.f32 %v1060_v24  ;;  %1218 = vmatpush.msra.mxu2 %v1209_v22 }
 0x2f3   :  { %v1055_v38 = vadd.f32 %v1054_v31, %v1035_v41 }
 0x2f4   :  { %v1073_v7 = vor.u32 1.1754944e-38, %v1072_v42  ;;  %vm1071_vm11 = vcmp.eq.f32.partialorder %v1070_v57, 8.507059e+37  ;;  %1219 = vmatpush.msra.mxu2 %v1208_v21  ;;  %v1280_v42 = vld [vmem:[%s2476_s8] ss:$0 sm:$0xff] }
 0x2f5   :  { %v1315_v53 = vpop.eup %1314  ;;  %v1281_v57 = vld [vmem:[%s2478_s10] ss:$0 sm:$0xff] }
 0x2f6   :  { %v1079_v58 = vadd.f32 1.0, %v1315_v53  ;;  %v1201_v53 = vld [vmem:[#allocation12 + $0x28] sm:$0xff] }
 0x2f8   :  { %v1317_v61 = vpop.eup %1316  ;;  %1318 = vrcp.f32 %v1079_v58  ;;  %v1091_v1 = vand.u32 2147483648, %v1079_v58  ;;  %v1089_v51 = vand.u32 2147483647, %v1079_v58  ;;  %vm1085_vm13 = vweird.f32 %v1079_v58 }
 0x2f9   :  { %v1062_v63 = vmul.f32 %v1317_v61, %v1060_v24  ;;  %vm1067_vm8 = vweird.f32 %v1317_v61  ;;  %v1206_v24 = vld [vmem:[#allocation12 + $0x50] sm:$0xff] }
 0x2fa   :  { %vm1068_vm10 = vmor %vm1066_vm9, %vm1067_vm8  ;;  %v1092_v39 = vor.u32 1.1754944e-38, %v1091_v1  ;;  %vm1090_vm15 = vcmp.eq.f32.partialorder %v1089_v51, 8.507059e+37 }
 0x2fb   :  { %v1063_v37 = vsub.f32 1.0, %v1062_v63 }
 0x2fd   :  { %v1064_v44 = vmul.f32 %v1317_v61, %v1063_v37  ;;  %v1196_v37 = vld [vmem:[#allocation12] sm:$0xff] }
 0x2fe   :  { %v1319_v27 = vpop.eup %1318 }
 0x2ff   :  { %v1081_v3 = vmul.f32 %v1319_v27, %v1079_v58  ;;  %v1065_v23 = vadd.f32 %v1317_v61, %v1064_v44  ;;  %vm1086_vm12 = vweird.f32 %v1319_v27  ;;  %v1279_v58 = vld [vmem:[%s2474_s6] ss:$0 sm:$0xff] }
 0x300   :  { %vm1087_vm14 = vmor %vm1085_vm13, %vm1086_vm12 }
 0x301   :  { %v1082_v18 = vsub.f32 1.0, %v1081_v3  ;;  %v1069_v4 = vsel %vm1068_vm10, %v1317_v61, %v1065_v23  ;;  %v1129_v61 = vpop.permute.xlu0 %1128 }
 0x302   :  { %v1074_v46 = vsel %vm1071_vm11, %v1073_v7, %v1069_v4  ;;  %v1134_v33 = vmul.f32 %v1279_v58, %v1129_v61 }
 0x303   :  { %v1083_v49 = vmul.f32 %v1319_v27, %v1082_v18  ;;  %v1095_v50 = vmul.f32 %v1074_v46, %v1055_v38 }
 0x305   :  { %v1096_v62 = vadd.f32 %v1095_v50, %v1015_v43  ;;  %v1084_v32 = vadd.f32 %v1319_v27, %v1083_v49 }
 0x307   :  { %1320 = vtanh.f32 %v1096_v62  ;;  %v1088_v10 = vsel %vm1087_vm14, %v1319_v27, %v1084_v32 }
 0x308   :  { %v1093_v26 = vsel %vm1090_vm15, %v1092_v39, %v1088_v10 }
 0x309   :  { %v1098_v2 = vsub.f32 1.0, %v1093_v26  ;;  %v1100_v11 = vmul.f32 %v1093_v26, %v2439_v48  ;;  %v1207_v48 = vld [vmem:[#allocation12 + $0x58] sm:$0xff] }
 0x30a   :  { %1220 = vmatpush.msra.mxu2 %v1207_v48 }
 0x30c   :  { %1221 = vmatpush.msra.mxu2 %v1206_v24 }
 0x30d   :  { %v1321_v6 = vpop.eup %1320 }
 0x30e   :  { %v1099_v8 = vmul.f32 %v1321_v6, %v1098_v2  ;;  %1222 = vmatpush.msra.mxu2 %v1205_v19 }
 0x310   :  { %v1101_v16 = vadd.f32 %v1100_v11, %v1099_v8  ;;  %1223 = vmatpush.msra.mxu2 %v1204_v60 }
 0x312   :  { %v1107_v17 = vmul.f32 %v1106_v12, %v1101_v16  ;;  %1224 = vmatpush.msra.mxu2 %v1203_v25 }
 0x314   :  { %1151 = vmatmul.f32.vlgmr.msra.gmra.mxu0 %v1107_v17  ;;  %1225 = vmatpush.msra.mxu2 %v1202_v52 }
 0x316   :  { %1226 = vmatpush.msra.mxu2 %v1201_v53 }
 0x318   :  { %1227 = vmatpush.msra.mxu2 %v1200_v28 }
 0x31a   :  { %1228 = vmatpush.msra.mxu2 %v1199_v29 }
 0x31c   :  { %1229 = vmatpush.msra.mxu2 %v1198_v45 }
 0x31e   :  { %1230 = vmatpush.msra.mxu2 %v1197_v36 }
 0x320   :  { %1231 = vmatpush.msra.mxu2 %v1196_v37 }
 0x391   :  { %v1152_v63 = vpop.f32.mrf.mxu0 }
 0x392   :  { %v1153_v59 = vadd.f32 %v1152_v63, %v1134_v33 }
 0x394   :  { %1191 = vmatmul.f32.vlgmr.msra.gmra.mxu1 %v1153_v59 }
 0x411   :  { %v1192_v40 = vpop.f32.mrf.mxu1 }
 0x412   :  { %v1193_v41 = vadd.f32 %v1280_v42, %v1192_v40 }
 0x414   :  { %v1195_v44 = vmax.f32 %v1193_v41, 0.0 }
 0x416   :  { %1232 = vmatmul.f32.vlgmr.msra.gmra.mxu2 %v1195_v44 }
 0x499   :  { %v1233_v27 = vpop.f32.mrf.mxu2 }
 0x49a   :  { %v1234_v30 = vadd.f32 %v1281_v57, %v1233_v27 }
 0x49c   :  { %1236 = vst [vmem:[#allocation14] sm:$0xff] %v1234_v30 }
 0x49d   :  { %1247 = dma.vmem_to_hbm [thread:$0]  %s1243_s14, 128, %s1245_s17, [#allocation5]  }
 0x49e   :  { %1624 = dma.done.wait [#allocation5], 128  }
 0x49f   :  { %1625 = vsyncadd [#allocation5], 4294967168 }
 0x4a0   :  { %1252 = vsyncpa [#allocation4], 1 }
 0x4a1   :  { %1253 = vsyncpa [#allocation7], 1 }
 0x4a2   :  { %1254 = vsyncpa [#allocation10], 1 }
 0x4a3   :  { %1255 = vsyncpa [#allocation13], 1 }
 0x4a4   :  { %1256 = vsyncpa [#allocation5], 1 }

</bundles_post_ra>
